<compile_context>
chip_gen: v6e
topology: v6e:2x2x1
jax: 0.10.0
libtpu: 0.0.40
codegen_flags: <defaults>
</compile_context>

<pallas_src>
import numpy as np
import jax
import jax.numpy as jnp
from jax.experimental import pallas as pl
from jax.experimental.pallas import tpu as pltpu

BT = 128                 # images per grid step (batch lives in the lane dim)
OC = 32                  # conv output channels
PS = 14                  # pooled spatial size (28 / 2)
NP = 16                  # 4x4 = 16 patch taps per pooled position
FPR = OC * PS            # 448 features per pooled row (order: v*32 + c)


# ------------------------------ Pallas kernel ------------------------------

def fused_cnn_kernel(q_ref, cw_ref, wfc_ref, fcb_ref, out_ref, f_row):
    """Fused Conv(1->32,3x3,pad=1) + MaxPool(2,2) + ReLU + Linear(6272->10).

    Batch is in the lane dimension (BT images per grid step).

    q_ref:   (14, 14, 16, BT) bf16  4x4 stride-2 input patches:
                                    q[u,v,p,n] = x_pad[n, 2u + p//4, 2v + p%4]
    cw_ref:  (128, 16)        bf16  conv/pool matrix, row = (ph*2+pw)*32 + c,
                                    col = (ph+kh)*4 + (pw+kw) holding w[c,kh,kw]
    wfc_ref: (14, 10, 448)    bf16  fc weight, per pooled row u, cols = v*32 + c
    fcb_ref: (10, 1)          f32   fc bias
    out_ref: (10, BT)         f32   logits (batch in lanes)
    f_row:   (448, BT)        bf16  VMEM scratch: one pooled row of features
    """
    cw = cw_ref[...]                                   # (128, 16) bf16, hoisted

    def row_body(u, logits):
        row = q_ref[u]                                 # (14, 16, BT) bf16

        # 14 pooled positions of row u: each one small MXU dot (M=128,K=16,N=BT)
        # followed by max over the 4 pool-offset blocks + ReLU on the VPU, then
        # an aligned 32-row bf16 store into the per-row feature scratch.
        for v in range(PS):
            cand = jnp.dot(cw, row[v],
                           preferred_element_type=jnp.float32)   # (128, BT) f32
            m = jnp.maximum(jnp.maximum(cand[0:32],  cand[32:64]),
                            jnp.maximum(cand[64:96], cand[96:128]))
            f_row[v * OC:(v + 1) * OC, :] = (
                jnp.maximum(m, 0.0).astype(jnp.bfloat16))        # (32, BT)

        # FC contribution of pooled row u: (10,448) @ (448,BT), f32 accumulate.
        return logits + jnp.dot(wfc_ref[u], f_row[...],
                                preferred_element_type=jnp.float32)

    logits = jax.lax.fori_loop(0, PS, row_body,
                               jnp.zeros((10, BT), jnp.float32))
    out_ref[...] = logits + fcb_ref[...]


# ----------------------------- forward wrapper -----------------------------

def simple_cnn_forward(x, conv_w, fc_w, fc_b):
    """x: (B, 1, 28, 28) float32 -> logits (B, 10) float32."""
    B = x.shape[0]
    assert x.shape[1:] == (1, 28, 28)
    Bp = ((B + BT - 1) // BT) * BT
    T = Bp // BT

    # zero-pad: batch -> Bp, spatial 28 -> 30 (conv padding = 1)
    xp = jnp.pad(x[:, 0], ((0, Bp - B), (1, 1), (1, 1)))          # (Bp, 30, 30)

    # 4x4 stride-2 patches (joint receptive field of conv3x3 + maxpool2x2),
    # patch index p = sh*4 + sw, laid out (batch-tile, u, v, p, n) so the patch
    # tap is in sublanes, batch is in lanes, and each grid step reads one
    # contiguous HBM slab.  bf16 halves the per-step DMA (~784 KB/step).
    patches = jnp.stack(
        [xp[:, sh:sh + 2 * PS:2, sw:sw + 2 * PS:2]
         for sh in range(4) for sw in range(4)],
        axis=-1)                                                  # (Bp,14,14,16)
    q = (patches.reshape(T, BT, PS, PS, NP)
         .transpose(0, 2, 3, 4, 1)                                # (T,14,14,16,BT)
         .astype(jnp.bfloat16))

    # conv weight (32,1,3,3) -> sparse conv/pool matrix (128, 16):
    # row = (ph*2+pw)*32 + c, col = (ph+kh)*4 + (pw+kw) carries w[c,kh,kw].
    w33 = conv_w.reshape(OC, 3, 3).astype(jnp.float32)
    cw = jnp.zeros((2, 2, OC, 4, 4), jnp.float32)
    for ph in range(2):
        for pw in range(2):
            cw = cw.at[ph, pw, :, ph:ph + 3, pw:pw + 3].set(w33)
    cw = cw.reshape(4 * OC, NP).astype(jnp.bfloat16)

    # fc weight (10, 6272) with PyTorch flatten order (c,u,v) -> (14, 10, 448):
    # per pooled row u, columns in (v, c) order matching the staged features.
    wfc = (fc_w.reshape(10, OC, PS, PS)       # (o, c, u, v)
           .transpose(2, 0, 3, 1)             # (u, o, v, c)
           .reshape(PS, 10, FPR)
           .astype(jnp.bfloat16))
    fcb = fc_b.reshape(10, 1).astype(jnp.float32)

    out = pl.pallas_call(
        fused_cnn_kernel,
        out_shape=jax.ShapeDtypeStruct((10, Bp), jnp.float32),
        grid=(T,),
        in_specs=[
            pl.BlockSpec((None, PS, PS, NP, BT), lambda t: (t, 0, 0, 0, 0)),
            pl.BlockSpec((4 * OC, NP), lambda t: (0, 0)),
            pl.BlockSpec((PS, 10, FPR), lambda t: (0, 0, 0)),
            pl.BlockSpec((10, 1), lambda t: (0, 0)),
        ],
        out_specs=pl.BlockSpec((10, BT), lambda t: (0, t)),
        scratch_shapes=[pltpu.VMEM((FPR, BT), jnp.bfloat16)],
        compiler_params=pltpu.CompilerParams(
            dimension_semantics=("parallel",),   # megacore sharding on v7x
        ),
    )(q, cw, wfc, fcb)

    return out.T[:B]                              # (B, 10)


# --------------------------- pure-JAX reference ----------------------------

def reference_forward(x, conv_w, fc_w, fc_b):
    conv = jax.lax.conv_general_dilated(
        x, conv_w, window_strides=(1, 1), padding=((1, 1), (1, 1)),
        dimension_numbers=("NCHW", "OIHW", "NCHW"))
    pooled = jax.lax.reduce_window(
        conv, -jnp.inf, jax.lax.max,
        window_dimensions=(1, 1, 2, 2), window_strides=(1, 1, 2, 2),
        padding="VALID")
    relu = jnp.maximum(pooled, 0.0)
    flat = relu.reshape(x.shape[0], -1)
    return flat @ fc_w.T + fc_b


# --------------------------------- main ------------------------------------

if __name__ == "__main__":
    key = jax.random.PRNGKey(0)
    k1, k2, k3, k4 = jax.random.split(key, 4)

    # Conv2d(1, 32, 3, bias=False): weight ~ U(-sf, sf), sf = 1/sqrt(in_c*kh*kw)
    sf = 1.0 / np.sqrt(1 * 3 * 3)
    conv_w = sf * (2.0 * jax.random.uniform(k1, (32, 1, 3, 3), jnp.float32) - 1.0)

    # Linear(32*14*14, 10): weight, bias ~ U(-1/sqrt(in_f), 1/sqrt(in_f))
    in_f = 32 * 14 * 14
    lim = 1.0 / np.sqrt(in_f)
    fc_w = jax.random.uniform(k2, (10, in_f), jnp.float32, minval=-lim, maxval=lim)
    fc_b = jax.random.uniform(k3, (10,), jnp.float32, minval=-lim, maxval=lim)

    # Spatial size is forced to 28x28 by fc in_features = 32 * 14 * 14.
    x = jax.random.normal(k4, (2, 1, 28, 28), dtype=jnp.float32)

    fwd = jax.jit(simple_cnn_forward)
    out = fwd(x, conv_w, fc_w, fc_b)
    jax.block_until_ready(out)

    ref = reference_forward(x, conv_w, fc_w, fc_b)
    assert out.shape == (2, 10)
    np.testing.assert_allclose(np.asarray(out), np.asarray(ref),
                               rtol=5e-2, atol=5e-2)

    print("KERNEL_OK")
</pallas_src>

<mosaic_0001>
module attributes {stable_mosaic.version = 11 : i64} {
  func.func @fused_cnn_kernel(%arg0: i32, %arg1: memref<1x14x14x16x128xbf16, #tpu.memory_space<vmem>>, %arg2: memref<128x16xbf16, #tpu.memory_space<vmem>>, %arg3: memref<14x10x448xbf16, #tpu.memory_space<vmem>>, %arg4: memref<10x1xf32, #tpu.memory_space<vmem>>, %arg5: memref<10x128xf32, #tpu.memory_space<vmem>>, %arg6: memref<448x128xbf16, #tpu.memory_space<vmem>>) attributes {dimension_semantics = [#tpu.dimension_semantics<parallel>], iteration_bounds = array<i64: 1>, scalar_prefetch = 0 : i64, scratch_operands = 1 : i64, tpu.core_type = #tpu.core_type<tc>, window_params = [{transform_indices = @transform_0, window_bounds = array<i64: 1, 14, 14, 16, 128>}, {pipeline_mode = #tpu.pipeline_mode<synchronous>, transform_indices = @transform_1, window_bounds = array<i64: 128, 16>}, {pipeline_mode = #tpu.pipeline_mode<synchronous>, transform_indices = @transform_2, window_bounds = array<i64: 14, 10, 448>}, {pipeline_mode = #tpu.pipeline_mode<synchronous>, transform_indices = @transform_3, window_bounds = array<i64: 10, 1>}, {transform_indices = @transform_4, window_bounds = array<i64: 10, 128>}]} {
    %c0 = arith.constant 0 : index
    %c0_0 = arith.constant 0 : index
    %0 = vector.load %arg2[%c0, %c0_0] : memref<128x16xbf16, #tpu.memory_space<vmem>>, vector<128x16xbf16>
    %cst = arith.constant 0.000000e+00 : f32
    %1 = vector.broadcast %cst : f32 to vector<10x128xf32>
    %c0_i32 = arith.constant 0 : i32
    %c14_i32 = arith.constant 14 : i32
    %2 = arith.addi %c0_i32, %c14_i32 : i32
    %c1_i32 = arith.constant 1 : i32
    %3 = scf.for %arg7 = %c0_i32 to %2 step %c1_i32 iter_args(%arg8 = %1) -> (vector<10x128xf32>)  : i32 {
      %c0_6 = arith.constant 0 : index
      %8 = arith.index_cast %arg7 : i32 to index
      %c0_7 = arith.constant 0 : index
      %c0_8 = arith.constant 0 : index
      %c0_9 = arith.constant 0 : index
      %9 = vector.load %arg1[%c0_6, %8, %c0_7, %c0_8, %c0_9] : memref<1x14x14x16x128xbf16, #tpu.memory_space<vmem>>, vector<1x1x14x16x128xbf16>
      %10 = vector.shape_cast %9 : vector<1x1x14x16x128xbf16> to vector<14x16x128xbf16>
      %11 = vector.extract_strided_slice %10 {offsets = [0, 0, 0], sizes = [1, 16, 128], strides = [1, 1, 1]} : vector<14x16x128xbf16> to vector<1x16x128xbf16>
      %12 = vector.shape_cast %11 : vector<1x16x128xbf16> to vector<16x128xbf16>
      %cst_10 = arith.constant dense<0.000000e+00> : vector<128x128xf32>
      %13 = tpu.matmul %0, %12, %cst_10 {dimension_numbers = #tpu.dot_dimension_numbers<[1], [0], [0], [1], [0, 0, 1, 1], [], []>} : vector<128x16xbf16>, vector<16x128xbf16>, vector<128x128xf32> -> vector<128x128xf32>
      %14 = vector.extract_strided_slice %13 {offsets = [0, 0], sizes = [32, 128], strides = [1, 1]} : vector<128x128xf32> to vector<32x128xf32>
      %15 = vector.extract_strided_slice %13 {offsets = [32, 0], sizes = [32, 128], strides = [1, 1]} : vector<128x128xf32> to vector<32x128xf32>
      %16 = arith.maximumf %14, %15 : vector<32x128xf32>
      %17 = vector.extract_strided_slice %13 {offsets = [64, 0], sizes = [32, 128], strides = [1, 1]} : vector<128x128xf32> to vector<32x128xf32>
      %18 = vector.extract_strided_slice %13 {offsets = [96, 0], sizes = [32, 128], strides = [1, 1]} : vector<128x128xf32> to vector<32x128xf32>
      %19 = arith.maximumf %17, %18 : vector<32x128xf32>
      %20 = arith.maximumf %16, %19 : vector<32x128xf32>
      %cst_11 = arith.constant 0.000000e+00 : f32
      %21 = vector.broadcast %cst_11 : f32 to vector<32x128xf32>
      %22 = arith.maximumf %20, %21 : vector<32x128xf32>
      %23 = arith.truncf %22 : vector<32x128xf32> to vector<32x128xbf16>
      %c0_12 = arith.constant 0 : index
      %c0_13 = arith.constant 0 : index
      %24 = vector.load %arg6[%c0_12, %c0_13] : memref<448x128xbf16, #tpu.memory_space<vmem>>, vector<32x128xbf16>
      tpu.vector_store %arg6[%c0_12, %c0_13], %23 {strides = array<i32>} : memref<448x128xbf16, #tpu.memory_space<vmem>>, vector<32x128xbf16>,
      %25 = vector.extract_strided_slice %10 {offsets = [1, 0, 0], sizes = [1, 16, 128], strides = [1, 1, 1]} : vector<14x16x128xbf16> to vector<1x16x128xbf16>
      %26 = vector.shape_cast %25 : vector<1x16x128xbf16> to vector<16x128xbf16>
      %cst_14 = arith.constant dense<0.000000e+00> : vector<128x128xf32>
      %27 = tpu.matmul %0, %26, %cst_14 {dimension_numbers = #tpu.dot_dimension_numbers<[1], [0], [0], [1], [0, 0, 1, 1], [], []>} : vector<128x16xbf16>, vector<16x128xbf16>, vector<128x128xf32> -> vector<128x128xf32>
      %28 = vector.extract_strided_slice %27 {offsets = [0, 0], sizes = [32, 128], strides = [1, 1]} : vector<128x128xf32> to vector<32x128xf32>
      %29 = vector.extract_strided_slice %27 {offsets = [32, 0], sizes = [32, 128], strides = [1, 1]} : vector<128x128xf32> to vector<32x128xf32>
      %30 = arith.maximumf %28, %29 : vector<32x128xf32>
      %31 = vector.extract_strided_slice %27 {offsets = [64, 0], sizes = [32, 128], strides = [1, 1]} : vector<128x128xf32> to vector<32x128xf32>
      %32 = vector.extract_strided_slice %27 {offsets = [96, 0], sizes = [32, 128], strides = [1, 1]} : vector<128x128xf32> to vector<32x128xf32>
      %33 = arith.maximumf %31, %32 : vector<32x128xf32>
      %34 = arith.maximumf %30, %33 : vector<32x128xf32>
      %cst_15 = arith.constant 0.000000e+00 : f32
      %35 = vector.broadcast %cst_15 : f32 to vector<32x128xf32>
      %36 = arith.maximumf %34, %35 : vector<32x128xf32>
      %37 = arith.truncf %36 : vector<32x128xf32> to vector<32x128xbf16>
      %c32 = arith.constant 32 : index
      %c0_16 = arith.constant 0 : index
      %38 = vector.load %arg6[%c32, %c0_16] : memref<448x128xbf16, #tpu.memory_space<vmem>>, vector<32x128xbf16>
      tpu.vector_store %arg6[%c32, %c0_16], %37 {strides = array<i32>} : memref<448x128xbf16, #tpu.memory_space<vmem>>, vector<32x128xbf16>,
      %39 = vector.extract_strided_slice %10 {offsets = [2, 0, 0], sizes = [1, 16, 128], strides = [1, 1, 1]} : vector<14x16x128xbf16> to vector<1x16x128xbf16>
      %40 = vector.shape_cast %39 : vector<1x16x128xbf16> to vector<16x128xbf16>
      %cst_17 = arith.constant dense<0.000000e+00> : vector<128x128xf32>
      %41 = tpu.matmul %0, %40, %cst_17 {dimension_numbers = #tpu.dot_dimension_numbers<[1], [0], [0], [1], [0, 0, 1, 1], [], []>} : vector<128x16xbf16>, vector<16x128xbf16>, vector<128x128xf32> -> vector<128x128xf32>
      %42 = vector.extract_strided_slice %41 {offsets = [0, 0], sizes = [32, 128], strides = [1, 1]} : vector<128x128xf32> to vector<32x128xf32>
      %43 = vector.extract_strided_slice %41 {offsets = [32, 0], sizes = [32, 128], strides = [1, 1]} : vector<128x128xf32> to vector<32x128xf32>
      %44 = arith.maximumf %42, %43 : vector<32x128xf32>
      %45 = vector.extract_strided_slice %41 {offsets = [64, 0], sizes = [32, 128], strides = [1, 1]} : vector<128x128xf32> to vector<32x128xf32>
      %46 = vector.extract_strided_slice %41 {offsets = [96, 0], sizes = [32, 128], strides = [1, 1]} : vector<128x128xf32> to vector<32x128xf32>
      %47 = arith.maximumf %45, %46 : vector<32x128xf32>
      %48 = arith.maximumf %44, %47 : vector<32x128xf32>
      %cst_18 = arith.constant 0.000000e+00 : f32
      %49 = vector.broadcast %cst_18 : f32 to vector<32x128xf32>
      %50 = arith.maximumf %48, %49 : vector<32x128xf32>
      %51 = arith.truncf %50 : vector<32x128xf32> to vector<32x128xbf16>
      %c64 = arith.constant 64 : index
      %c0_19 = arith.constant 0 : index
      %52 = vector.load %arg6[%c64, %c0_19] : memref<448x128xbf16, #tpu.memory_space<vmem>>, vector<32x128xbf16>
      tpu.vector_store %arg6[%c64, %c0_19], %51 {strides = array<i32>} : memref<448x128xbf16, #tpu.memory_space<vmem>>, vector<32x128xbf16>,
      %53 = vector.extract_strided_slice %10 {offsets = [3, 0, 0], sizes = [1, 16, 128], strides = [1, 1, 1]} : vector<14x16x128xbf16> to vector<1x16x128xbf16>
      %54 = vector.shape_cast %53 : vector<1x16x128xbf16> to vector<16x128xbf16>
      %cst_20 = arith.constant dense<0.000000e+00> : vector<128x128xf32>
      %55 = tpu.matmul %0, %54, %cst_20 {dimension_numbers = #tpu.dot_dimension_numbers<[1], [0], [0], [1], [0, 0, 1, 1], [], []>} : vector<128x16xbf16>, vector<16x128xbf16>, vector<128x128xf32> -> vector<128x128xf32>
      %56 = vector.extract_strided_slice %55 {offsets = [0, 0], sizes = [32, 128], strides = [1, 1]} : vector<128x128xf32> to vector<32x128xf32>
      %57 = vector.extract_strided_slice %55 {offsets = [32, 0], sizes = [32, 128], strides = [1, 1]} : vector<128x128xf32> to vector<32x128xf32>
      %58 = arith.maximumf %56, %57 : vector<32x128xf32>
      %59 = vector.extract_strided_slice %55 {offsets = [64, 0], sizes = [32, 128], strides = [1, 1]} : vector<128x128xf32> to vector<32x128xf32>
      %60 = vector.extract_strided_slice %55 {offsets = [96, 0], sizes = [32, 128], strides = [1, 1]} : vector<128x128xf32> to vector<32x128xf32>
      %61 = arith.maximumf %59, %60 : vector<32x128xf32>
      %62 = arith.maximumf %58, %61 : vector<32x128xf32>
      %cst_21 = arith.constant 0.000000e+00 : f32
      %63 = vector.broadcast %cst_21 : f32 to vector<32x128xf32>
      %64 = arith.maximumf %62, %63 : vector<32x128xf32>
      %65 = arith.truncf %64 : vector<32x128xf32> to vector<32x128xbf16>
      %c96 = arith.constant 96 : index
      %c0_22 = arith.constant 0 : index
      %66 = vector.load %arg6[%c96, %c0_22] : memref<448x128xbf16, #tpu.memory_space<vmem>>, vector<32x128xbf16>
      tpu.vector_store %arg6[%c96, %c0_22], %65 {strides = array<i32>} : memref<448x128xbf16, #tpu.memory_space<vmem>>, vector<32x128xbf16>,
      %67 = vector.extract_strided_slice %10 {offsets = [4, 0, 0], sizes = [1, 16, 128], strides = [1, 1, 1]} : vector<14x16x128xbf16> to vector<1x16x128xbf16>
      %68 = vector.shape_cast %67 : vector<1x16x128xbf16> to vector<16x128xbf16>
      %cst_23 = arith.constant dense<0.000000e+00> : vector<128x128xf32>
      %69 = tpu.matmul %0, %68, %cst_23 {dimension_numbers = #tpu.dot_dimension_numbers<[1], [0], [0], [1], [0, 0, 1, 1], [], []>} : vector<128x16xbf16>, vector<16x128xbf16>, vector<128x128xf32> -> vector<128x128xf32>
      %70 = vector.extract_strided_slice %69 {offsets = [0, 0], sizes = [32, 128], strides = [1, 1]} : vector<128x128xf32> to vector<32x128xf32>
      %71 = vector.extract_strided_slice %69 {offsets = [32, 0], sizes = [32, 128], strides = [1, 1]} : vector<128x128xf32> to vector<32x128xf32>
      %72 = arith.maximumf %70, %71 : vector<32x128xf32>
      %73 = vector.extract_strided_slice %69 {offsets = [64, 0], sizes = [32, 128], strides = [1, 1]} : vector<128x128xf32> to vector<32x128xf32>
      %74 = vector.extract_strided_slice %69 {offsets = [96, 0], sizes = [32, 128], strides = [1, 1]} : vector<128x128xf32> to vector<32x128xf32>
      %75 = arith.maximumf %73, %74 : vector<32x128xf32>
      %76 = arith.maximumf %72, %75 : vector<32x128xf32>
      %cst_24 = arith.constant 0.000000e+00 : f32
      %77 = vector.broadcast %cst_24 : f32 to vector<32x128xf32>
      %78 = arith.maximumf %76, %77 : vector<32x128xf32>
      %79 = arith.truncf %78 : vector<32x128xf32> to vector<32x128xbf16>
      %c128 = arith.constant 128 : index
      %c0_25 = arith.constant 0 : index
      %80 = vector.load %arg6[%c128, %c0_25] : memref<448x128xbf16, #tpu.memory_space<vmem>>, vector<32x128xbf16>
      tpu.vector_store %arg6[%c128, %c0_25], %79 {strides = array<i32>} : memref<448x128xbf16, #tpu.memory_space<vmem>>, vector<32x128xbf16>,
      %81 = vector.extract_strided_slice %10 {offsets = [5, 0, 0], sizes = [1, 16, 128], strides = [1, 1, 1]} : vector<14x16x128xbf16> to vector<1x16x128xbf16>
      %82 = vector.shape_cast %81 : vector<1x16x128xbf16> to vector<16x128xbf16>
      %cst_26 = arith.constant dense<0.000000e+00> : vector<128x128xf32>
      %83 = tpu.matmul %0, %82, %cst_26 {dimension_numbers = #tpu.dot_dimension_numbers<[1], [0], [0], [1], [0, 0, 1, 1], [], []>} : vector<128x16xbf16>, vector<16x128xbf16>, vector<128x128xf32> -> vector<128x128xf32>
      %84 = vector.extract_strided_slice %83 {offsets = [0, 0], sizes = [32, 128], strides = [1, 1]} : vector<128x128xf32> to vector<32x128xf32>
      %85 = vector.extract_strided_slice %83 {offsets = [32, 0], sizes = [32, 128], strides = [1, 1]} : vector<128x128xf32> to vector<32x128xf32>
      %86 = arith.maximumf %84, %85 : vector<32x128xf32>
      %87 = vector.extract_strided_slice %83 {offsets = [64, 0], sizes = [32, 128], strides = [1, 1]} : vector<128x128xf32> to vector<32x128xf32>
      %88 = vector.extract_strided_slice %83 {offsets = [96, 0], sizes = [32, 128], strides = [1, 1]} : vector<128x128xf32> to vector<32x128xf32>
      %89 = arith.maximumf %87, %88 : vector<32x128xf32>
      %90 = arith.maximumf %86, %89 : vector<32x128xf32>
      %cst_27 = arith.constant 0.000000e+00 : f32
      %91 = vector.broadcast %cst_27 : f32 to vector<32x128xf32>
      %92 = arith.maximumf %90, %91 : vector<32x128xf32>
      %93 = arith.truncf %92 : vector<32x128xf32> to vector<32x128xbf16>
      %c160 = arith.constant 160 : index
      %c0_28 = arith.constant 0 : index
      %94 = vector.load %arg6[%c160, %c0_28] : memref<448x128xbf16, #tpu.memory_space<vmem>>, vector<32x128xbf16>
      tpu.vector_store %arg6[%c160, %c0_28], %93 {strides = array<i32>} : memref<448x128xbf16, #tpu.memory_space<vmem>>, vector<32x128xbf16>,
      %95 = vector.extract_strided_slice %10 {offsets = [6, 0, 0], sizes = [1, 16, 128], strides = [1, 1, 1]} : vector<14x16x128xbf16> to vector<1x16x128xbf16>
      %96 = vector.shape_cast %95 : vector<1x16x128xbf16> to vector<16x128xbf16>
      %cst_29 = arith.constant dense<0.000000e+00> : vector<128x128xf32>
      %97 = tpu.matmul %0, %96, %cst_29 {dimension_numbers = #tpu.dot_dimension_numbers<[1], [0], [0], [1], [0, 0, 1, 1], [], []>} : vector<128x16xbf16>, vector<16x128xbf16>, vector<128x128xf32> -> vector<128x128xf32>
      %98 = vector.extract_strided_slice %97 {offsets = [0, 0], sizes = [32, 128], strides = [1, 1]} : vector<128x128xf32> to vector<32x128xf32>
      %99 = vector.extract_strided_slice %97 {offsets = [32, 0], sizes = [32, 128], strides = [1, 1]} : vector<128x128xf32> to vector<32x128xf32>
      %100 = arith.maximumf %98, %99 : vector<32x128xf32>
      %101 = vector.extract_strided_slice %97 {offsets = [64, 0], sizes = [32, 128], strides = [1, 1]} : vector<128x128xf32> to vector<32x128xf32>
      %102 = vector.extract_strided_slice %97 {offsets = [96, 0], sizes = [32, 128], strides = [1, 1]} : vector<128x128xf32> to vector<32x128xf32>
      %103 = arith.maximumf %101, %102 : vector<32x128xf32>
      %104 = arith.maximumf %100, %103 : vector<32x128xf32>
      %cst_30 = arith.constant 0.000000e+00 : f32
      %105 = vector.broadcast %cst_30 : f32 to vector<32x128xf32>
      %106 = arith.maximumf %104, %105 : vector<32x128xf32>
      %107 = arith.truncf %106 : vector<32x128xf32> to vector<32x128xbf16>
      %c192 = arith.constant 192 : index
      %c0_31 = arith.constant 0 : index
      %108 = vector.load %arg6[%c192, %c0_31] : memref<448x128xbf16, #tpu.memory_space<vmem>>, vector<32x128xbf16>
      tpu.vector_store %arg6[%c192, %c0_31], %107 {strides = array<i32>} : memref<448x128xbf16, #tpu.memory_space<vmem>>, vector<32x128xbf16>,
      %109 = vector.extract_strided_slice %10 {offsets = [7, 0, 0], sizes = [1, 16, 128], strides = [1, 1, 1]} : vector<14x16x128xbf16> to vector<1x16x128xbf16>
      %110 = vector.shape_cast %109 : vector<1x16x128xbf16> to vector<16x128xbf16>
      %cst_32 = arith.constant dense<0.000000e+00> : vector<128x128xf32>
      %111 = tpu.matmul %0, %110, %cst_32 {dimension_numbers = #tpu.dot_dimension_numbers<[1], [0], [0], [1], [0, 0, 1, 1], [], []>} : vector<128x16xbf16>, vector<16x128xbf16>, vector<128x128xf32> -> vector<128x128xf32>
      %112 = vector.extract_strided_slice %111 {offsets = [0, 0], sizes = [32, 128], strides = [1, 1]} : vector<128x128xf32> to vector<32x128xf32>
      %113 = vector.extract_strided_slice %111 {offsets = [32, 0], sizes = [32, 128], strides = [1, 1]} : vector<128x128xf32> to vector<32x128xf32>
      %114 = arith.maximumf %112, %113 : vector<32x128xf32>
      %115 = vector.extract_strided_slice %111 {offsets = [64, 0], sizes = [32, 128], strides = [1, 1]} : vector<128x128xf32> to vector<32x128xf32>
      %116 = vector.extract_strided_slice %111 {offsets = [96, 0], sizes = [32, 128], strides = [1, 1]} : vector<128x128xf32> to vector<32x128xf32>
      %117 = arith.maximumf %115, %116 : vector<32x128xf32>
      %118 = arith.maximumf %114, %117 : vector<32x128xf32>
      %cst_33 = arith.constant 0.000000e+00 : f32
      %119 = vector.broadcast %cst_33 : f32 to vector<32x128xf32>
      %120 = arith.maximumf %118, %119 : vector<32x128xf32>
      %121 = arith.truncf %120 : vector<32x128xf32> to vector<32x128xbf16>
      %c224 = arith.constant 224 : index
      %c0_34 = arith.constant 0 : index
      %122 = vector.load %arg6[%c224, %c0_34] : memref<448x128xbf16, #tpu.memory_space<vmem>>, vector<32x128xbf16>
      tpu.vector_store %arg6[%c224, %c0_34], %121 {strides = array<i32>} : memref<448x128xbf16, #tpu.memory_space<vmem>>, vector<32x128xbf16>,
      %123 = vector.extract_strided_slice %10 {offsets = [8, 0, 0], sizes = [1, 16, 128], strides = [1, 1, 1]} : vector<14x16x128xbf16> to vector<1x16x128xbf16>
      %124 = vector.shape_cast %123 : vector<1x16x128xbf16> to vector<16x128xbf16>
      %cst_35 = arith.constant dense<0.000000e+00> : vector<128x128xf32>
      %125 = tpu.matmul %0, %124, %cst_35 {dimension_numbers = #tpu.dot_dimension_numbers<[1], [0], [0], [1], [0, 0, 1, 1], [], []>} : vector<128x16xbf16>, vector<16x128xbf16>, vector<128x128xf32> -> vector<128x128xf32>
      %126 = vector.extract_strided_slice %125 {offsets = [0, 0], sizes = [32, 128], strides = [1, 1]} : vector<128x128xf32> to vector<32x128xf32>
      %127 = vector.extract_strided_slice %125 {offsets = [32, 0], sizes = [32, 128], strides = [1, 1]} : vector<128x128xf32> to vector<32x128xf32>
      %128 = arith.maximumf %126, %127 : vector<32x128xf32>
      %129 = vector.extract_strided_slice %125 {offsets = [64, 0], sizes = [32, 128], strides = [1, 1]} : vector<128x128xf32> to vector<32x128xf32>
      %130 = vector.extract_strided_slice %125 {offsets = [96, 0], sizes = [32, 128], strides = [1, 1]} : vector<128x128xf32> to vector<32x128xf32>
      %131 = arith.maximumf %129, %130 : vector<32x128xf32>
      %132 = arith.maximumf %128, %131 : vector<32x128xf32>
      %cst_36 = arith.constant 0.000000e+00 : f32
      %133 = vector.broadcast %cst_36 : f32 to vector<32x128xf32>
      %134 = arith.maximumf %132, %133 : vector<32x128xf32>
      %135 = arith.truncf %134 : vector<32x128xf32> to vector<32x128xbf16>
      %c256 = arith.constant 256 : index
      %c0_37 = arith.constant 0 : index
      %136 = vector.load %arg6[%c256, %c0_37] : memref<448x128xbf16, #tpu.memory_space<vmem>>, vector<32x128xbf16>
      tpu.vector_store %arg6[%c256, %c0_37], %135 {strides = array<i32>} : memref<448x128xbf16, #tpu.memory_space<vmem>>, vector<32x128xbf16>,
      %137 = vector.extract_strided_slice %10 {offsets = [9, 0, 0], sizes = [1, 16, 128], strides = [1, 1, 1]} : vector<14x16x128xbf16> to vector<1x16x128xbf16>
      %138 = vector.shape_cast %137 : vector<1x16x128xbf16> to vector<16x128xbf16>
      %cst_38 = arith.constant dense<0.000000e+00> : vector<128x128xf32>
      %139 = tpu.matmul %0, %138, %cst_38 {dimension_numbers = #tpu.dot_dimension_numbers<[1], [0], [0], [1], [0, 0, 1, 1], [], []>} : vector<128x16xbf16>, vector<16x128xbf16>, vector<128x128xf32> -> vector<128x128xf32>
      %140 = vector.extract_strided_slice %139 {offsets = [0, 0], sizes = [32, 128], strides = [1, 1]} : vector<128x128xf32> to vector<32x128xf32>
      %141 = vector.extract_strided_slice %139 {offsets = [32, 0], sizes = [32, 128], strides = [1, 1]} : vector<128x128xf32> to vector<32x128xf32>
      %142 = arith.maximumf %140, %141 : vector<32x128xf32>
      %143 = vector.extract_strided_slice %139 {offsets = [64, 0], sizes = [32, 128], strides = [1, 1]} : vector<128x128xf32> to vector<32x128xf32>
      %144 = vector.extract_strided_slice %139 {offsets = [96, 0], sizes = [32, 128], strides = [1, 1]} : vector<128x128xf32> to vector<32x128xf32>
      %145 = arith.maximumf %143, %144 : vector<32x128xf32>
      %146 = arith.maximumf %142, %145 : vector<32x128xf32>
      %cst_39 = arith.constant 0.000000e+00 : f32
      %147 = vector.broadcast %cst_39 : f32 to vector<32x128xf32>
      %148 = arith.maximumf %146, %147 : vector<32x128xf32>
      %149 = arith.truncf %148 : vector<32x128xf32> to vector<32x128xbf16>
      %c288 = arith.constant 288 : index
      %c0_40 = arith.constant 0 : index
      %150 = vector.load %arg6[%c288, %c0_40] : memref<448x128xbf16, #tpu.memory_space<vmem>>, vector<32x128xbf16>
      tpu.vector_store %arg6[%c288, %c0_40], %149 {strides = array<i32>} : memref<448x128xbf16, #tpu.memory_space<vmem>>, vector<32x128xbf16>,
      %151 = vector.extract_strided_slice %10 {offsets = [10, 0, 0], sizes = [1, 16, 128], strides = [1, 1, 1]} : vector<14x16x128xbf16> to vector<1x16x128xbf16>
      %152 = vector.shape_cast %151 : vector<1x16x128xbf16> to vector<16x128xbf16>
      %cst_41 = arith.constant dense<0.000000e+00> : vector<128x128xf32>
      %153 = tpu.matmul %0, %152, %cst_41 {dimension_numbers = #tpu.dot_dimension_numbers<[1], [0], [0], [1], [0, 0, 1, 1], [], []>} : vector<128x16xbf16>, vector<16x128xbf16>, vector<128x128xf32> -> vector<128x128xf32>
      %154 = vector.extract_strided_slice %153 {offsets = [0, 0], sizes = [32, 128], strides = [1, 1]} : vector<128x128xf32> to vector<32x128xf32>
      %155 = vector.extract_strided_slice %153 {offsets = [32, 0], sizes = [32, 128], strides = [1, 1]} : vector<128x128xf32> to vector<32x128xf32>
      %156 = arith.maximumf %154, %155 : vector<32x128xf32>
      %157 = vector.extract_strided_slice %153 {offsets = [64, 0], sizes = [32, 128], strides = [1, 1]} : vector<128x128xf32> to vector<32x128xf32>
      %158 = vector.extract_strided_slice %153 {offsets = [96, 0], sizes = [32, 128], strides = [1, 1]} : vector<128x128xf32> to vector<32x128xf32>
      %159 = arith.maximumf %157, %158 : vector<32x128xf32>
      %160 = arith.maximumf %156, %159 : vector<32x128xf32>
      %cst_42 = arith.constant 0.000000e+00 : f32
      %161 = vector.broadcast %cst_42 : f32 to vector<32x128xf32>
      %162 = arith.maximumf %160, %161 : vector<32x128xf32>
      %163 = arith.truncf %162 : vector<32x128xf32> to vector<32x128xbf16>
      %c320 = arith.constant 320 : index
      %c0_43 = arith.constant 0 : index
      %164 = vector.load %arg6[%c320, %c0_43] : memref<448x128xbf16, #tpu.memory_space<vmem>>, vector<32x128xbf16>
      tpu.vector_store %arg6[%c320, %c0_43], %163 {strides = array<i32>} : memref<448x128xbf16, #tpu.memory_space<vmem>>, vector<32x128xbf16>,
      %165 = vector.extract_strided_slice %10 {offsets = [11, 0, 0], sizes = [1, 16, 128], strides = [1, 1, 1]} : vector<14x16x128xbf16> to vector<1x16x128xbf16>
      %166 = vector.shape_cast %165 : vector<1x16x128xbf16> to vector<16x128xbf16>
      %cst_44 = arith.constant dense<0.000000e+00> : vector<128x128xf32>
      %167 = tpu.matmul %0, %166, %cst_44 {dimension_numbers = #tpu.dot_dimension_numbers<[1], [0], [0], [1], [0, 0, 1, 1], [], []>} : vector<128x16xbf16>, vector<16x128xbf16>, vector<128x128xf32> -> vector<128x128xf32>
      %168 = vector.extract_strided_slice %167 {offsets = [0, 0], sizes = [32, 128], strides = [1, 1]} : vector<128x128xf32> to vector<32x128xf32>
      %169 = vector.extract_strided_slice %167 {offsets = [32, 0], sizes = [32, 128], strides = [1, 1]} : vector<128x128xf32> to vector<32x128xf32>
      %170 = arith.maximumf %168, %169 : vector<32x128xf32>
      %171 = vector.extract_strided_slice %167 {offsets = [64, 0], sizes = [32, 128], strides = [1, 1]} : vector<128x128xf32> to vector<32x128xf32>
      %172 = vector.extract_strided_slice %167 {offsets = [96, 0], sizes = [32, 128], strides = [1, 1]} : vector<128x128xf32> to vector<32x128xf32>
      %173 = arith.maximumf %171, %172 : vector<32x128xf32>
      %174 = arith.maximumf %170, %173 : vector<32x128xf32>
      %cst_45 = arith.constant 0.000000e+00 : f32
      %175 = vector.broadcast %cst_45 : f32 to vector<32x128xf32>
      %176 = arith.maximumf %174, %175 : vector<32x128xf32>
      %177 = arith.truncf %176 : vector<32x128xf32> to vector<32x128xbf16>
      %c352 = arith.constant 352 : index
      %c0_46 = arith.constant 0 : index
      %178 = vector.load %arg6[%c352, %c0_46] : memref<448x128xbf16, #tpu.memory_space<vmem>>, vector<32x128xbf16>
      tpu.vector_store %arg6[%c352, %c0_46], %177 {strides = array<i32>} : memref<448x128xbf16, #tpu.memory_space<vmem>>, vector<32x128xbf16>,
      %179 = vector.extract_strided_slice %10 {offsets = [12, 0, 0], sizes = [1, 16, 128], strides = [1, 1, 1]} : vector<14x16x128xbf16> to vector<1x16x128xbf16>
      %180 = vector.shape_cast %179 : vector<1x16x128xbf16> to vector<16x128xbf16>
      %cst_47 = arith.constant dense<0.000000e+00> : vector<128x128xf32>
      %181 = tpu.matmul %0, %180, %cst_47 {dimension_numbers = #tpu.dot_dimension_numbers<[1], [0], [0], [1], [0, 0, 1, 1], [], []>} : vector<128x16xbf16>, vector<16x128xbf16>, vector<128x128xf32> -> vector<128x128xf32>
      %182 = vector.extract_strided_slice %181 {offsets = [0, 0], sizes = [32, 128], strides = [1, 1]} : vector<128x128xf32> to vector<32x128xf32>
      %183 = vector.extract_strided_slice %181 {offsets = [32, 0], sizes = [32, 128], strides = [1, 1]} : vector<128x128xf32> to vector<32x128xf32>
      %184 = arith.maximumf %182, %183 : vector<32x128xf32>
      %185 = vector.extract_strided_slice %181 {offsets = [64, 0], sizes = [32, 128], strides = [1, 1]} : vector<128x128xf32> to vector<32x128xf32>
      %186 = vector.extract_strided_slice %181 {offsets = [96, 0], sizes = [32, 128], strides = [1, 1]} : vector<128x128xf32> to vector<32x128xf32>
      %187 = arith.maximumf %185, %186 : vector<32x128xf32>
      %188 = arith.maximumf %184, %187 : vector<32x128xf32>
      %cst_48 = arith.constant 0.000000e+00 : f32
      %189 = vector.broadcast %cst_48 : f32 to vector<32x128xf32>
      %190 = arith.maximumf %188, %189 : vector<32x128xf32>
      %191 = arith.truncf %190 : vector<32x128xf32> to vector<32x128xbf16>
      %c384 = arith.constant 384 : index
      %c0_49 = arith.constant 0 : index
      %192 = vector.load %arg6[%c384, %c0_49] : memref<448x128xbf16, #tpu.memory_space<vmem>>, vector<32x128xbf16>
      tpu.vector_store %arg6[%c384, %c0_49], %191 {strides = array<i32>} : memref<448x128xbf16, #tpu.memory_space<vmem>>, vector<32x128xbf16>,
      %193 = vector.extract_strided_slice %10 {offsets = [13, 0, 0], sizes = [1, 16, 128], strides = [1, 1, 1]} : vector<14x16x128xbf16> to vector<1x16x128xbf16>
      %194 = vector.shape_cast %193 : vector<1x16x128xbf16> to vector<16x128xbf16>
      %cst_50 = arith.constant dense<0.000000e+00> : vector<128x128xf32>
      %195 = tpu.matmul %0, %194, %cst_50 {dimension_numbers = #tpu.dot_dimension_numbers<[1], [0], [0], [1], [0, 0, 1, 1], [], []>} : vector<128x16xbf16>, vector<16x128xbf16>, vector<128x128xf32> -> vector<128x128xf32>
      %196 = vector.extract_strided_slice %195 {offsets = [0, 0], sizes = [32, 128], strides = [1, 1]} : vector<128x128xf32> to vector<32x128xf32>
      %197 = vector.extract_strided_slice %195 {offsets = [32, 0], sizes = [32, 128], strides = [1, 1]} : vector<128x128xf32> to vector<32x128xf32>
      %198 = arith.maximumf %196, %197 : vector<32x128xf32>
      %199 = vector.extract_strided_slice %195 {offsets = [64, 0], sizes = [32, 128], strides = [1, 1]} : vector<128x128xf32> to vector<32x128xf32>
      %200 = vector.extract_strided_slice %195 {offsets = [96, 0], sizes = [32, 128], strides = [1, 1]} : vector<128x128xf32> to vector<32x128xf32>
      %201 = arith.maximumf %199, %200 : vector<32x128xf32>
      %202 = arith.maximumf %198, %201 : vector<32x128xf32>
      %cst_51 = arith.constant 0.000000e+00 : f32
      %203 = vector.broadcast %cst_51 : f32 to vector<32x128xf32>
      %204 = arith.maximumf %202, %203 : vector<32x128xf32>
      %205 = arith.truncf %204 : vector<32x128xf32> to vector<32x128xbf16>
      %c416 = arith.constant 416 : index
      %c0_52 = arith.constant 0 : index
      %206 = vector.load %arg6[%c416, %c0_52] : memref<448x128xbf16, #tpu.memory_space<vmem>>, vector<32x128xbf16>
      tpu.vector_store %arg6[%c416, %c0_52], %205 {strides = array<i32>} : memref<448x128xbf16, #tpu.memory_space<vmem>>, vector<32x128xbf16>,
      %207 = arith.index_cast %arg7 : i32 to index
      %c0_53 = arith.constant 0 : index
      %c0_54 = arith.constant 0 : index
      %208 = vector.load %arg3[%207, %c0_53, %c0_54] : memref<14x10x448xbf16, #tpu.memory_space<vmem>>, vector<1x10x448xbf16>
      %209 = vector.shape_cast %208 : vector<1x10x448xbf16> to vector<10x448xbf16>
      %c0_55 = arith.constant 0 : index
      %c0_56 = arith.constant 0 : index
      %210 = vector.load %arg6[%c0_55, %c0_56] : memref<448x128xbf16, #tpu.memory_space<vmem>>, vector<448x128xbf16>
      %cst_57 = arith.constant dense<0.000000e+00> : vector<10x128xf32>
      %211 = tpu.matmul %209, %210, %cst_57 {dimension_numbers = #tpu.dot_dimension_numbers<[1], [0], [0], [1], [0, 0, 1, 1], [], []>} : vector<10x448xbf16>, vector<448x128xbf16>, vector<10x128xf32> -> vector<10x128xf32>
      %212 = arith.addf %arg8, %211 : vector<10x128xf32>
      scf.yield %212 : vector<10x128xf32>
    }
    %c14_i32_1 = arith.constant 14 : i32
    %c0_2 = arith.constant 0 : index
    %c0_3 = arith.constant 0 : index
    %4 = vector.load %arg4[%c0_2, %c0_3] : memref<10x1xf32, #tpu.memory_space<vmem>>, vector<10x1xf32>
    %5 = vector.broadcast %4 : vector<10x1xf32> to vector<10x128xf32>
    %6 = arith.addf %3, %5 : vector<10x128xf32>
    %c0_4 = arith.constant 0 : index
    %c0_5 = arith.constant 0 : index
    %7 = vector.load %arg5[%c0_4, %c0_5] : memref<10x128xf32, #tpu.memory_space<vmem>>, vector<10x128xf32>
    tpu.vector_store %arg5[%c0_4, %c0_5], %6 {strides = array<i32>} : memref<10x128xf32, #tpu.memory_space<vmem>>, vector<10x128xf32>,
    return
  }
  func.func @transform_0(%arg0: i32) -> (i32, i32, i32, i32, i32) {
    %c0_i32 = arith.constant 0 : i32
    %c0_i32_0 = arith.constant 0 : i32
    %c0_i32_1 = arith.constant 0 : i32
    %c0_i32_2 = arith.constant 0 : i32
    %c0_i32_3 = arith.constant 0 : i32
    return %arg0, %c0_i32, %c0_i32_0, %c0_i32_1, %c0_i32_2 : i32, i32, i32, i32, i32
  }
  func.func @transform_1(%arg0: i32) -> (i32, i32) {
    %c0_i32 = arith.constant 0 : i32
    %c0_i32_0 = arith.constant 0 : i32
    %c0_i32_1 = arith.constant 0 : i32
    return %c0_i32, %c0_i32_0 : i32, i32
  }
  func.func @transform_2(%arg0: i32) -> (i32, i32, i32) {
    %c0_i32 = arith.constant 0 : i32
    %c0_i32_0 = arith.constant 0 : i32
    %c0_i32_1 = arith.constant 0 : i32
    %c0_i32_2 = arith.constant 0 : i32
    return %c0_i32, %c0_i32_0, %c0_i32_1 : i32, i32, i32
  }
  func.func @transform_3(%arg0: i32) -> (i32, i32) {
    %c0_i32 = arith.constant 0 : i32
    %c0_i32_0 = arith.constant 0 : i32
    %c0_i32_1 = arith.constant 0 : i32
    return %c0_i32, %c0_i32_0 : i32, i32
  }
  func.func @transform_4(%arg0: i32) -> (i32, i32) {
    %c0_i32 = arith.constant 0 : i32
    %c0_i32_0 = arith.constant 0 : i32
    return %c0_i32, %arg0 : i32, i32
  }
}

</mosaic_0001>

<bundles_post_ra>
// kernel: simple_cnn_forward.1
= control target key start
LH: loop header
LB: loop body
LE: loop exit
PB: predicated region body
PF: predicated region fallthrough
CT: control target
= control target key end

     0   :  { %v3516_v16 = vmov 0.0   ;;  %v3518_v17 = vmov 0.0   ;;  %s3520_s21 = smov 0   ;;  %s4009_s0 = inlined_call_operand.vmem [shape: bf16[1,14,14,16,128], index: 0, kind: input, shape index: {}]   ;;  %s4010_s1 = inlined_call_operand.vmem [shape: bf16[128,16], index: 1, kind: input, shape index: {}]   ;;  %s4011_s2 = inlined_call_operand.vmem [shape: bf16[14,10,448], index: 2, kind: input, shape index: {}]   ;;  %s4012_s3 = inlined_call_operand.vmem [shape: f32[10,1], index: 3, kind: input, shape index: {}]   ;;  %s4013_s4 = inlined_call_operand.vmem [shape: f32[10,128], index: 4, kind: output, shape index: {}]  }
   0x1   :  { %v3439_v0 = vld [vmem:[%s4010_s1] sm:$0xf]  ;;  %v3444_v1 = vld [vmem:[%s4010_s1 + $0x4] sm:$0xf]  ;;  %v3449_v2 = vld [vmem:[%s4010_s1 + $0x8] sm:$0xf] }
   0x2   :  { %v3454_v3 = vld [vmem:[%s4010_s1 + $0xc] sm:$0xf]  ;;  %v3459_v4 = vld [vmem:[%s4010_s1 + $0x10] sm:$0xf]  ;;  %v3464_v5 = vld [vmem:[%s4010_s1 + $0x14] sm:$0xf] }
   0x3   :  { %v3469_v6 = vld [vmem:[%s4010_s1 + $0x18] sm:$0xf]  ;;  %v3474_v7 = vld [vmem:[%s4010_s1 + $0x1c] sm:$0xf]  ;;  %v3479_v8 = vld [vmem:[%s4010_s1 + $0x20] sm:$0xf] }
   0x4   :  { %v3484_v9 = vld [vmem:[%s4010_s1 + $0x24] sm:$0xf]  ;;  %v3489_v10 = vld [vmem:[%s4010_s1 + $0x28] sm:$0xf]  ;;  %v3494_v11 = vld [vmem:[%s4010_s1 + $0x2c] sm:$0xf] }
   0x5   :  { %v3499_v12 = vld [vmem:[%s4010_s1 + $0x30] sm:$0xf]  ;;  %v3504_v13 = vld [vmem:[%s4010_s1 + $0x34] sm:$0xf]  ;;  %v3509_v14 = vld [vmem:[%s4010_s1 + $0x38] sm:$0xf] }
   0x6   :  { %v3514_v15 = vld [vmem:[%s4010_s1 + $0x3c] sm:$0xf] }
   0x7 LB: > { %v3533_v18 = vcombine.low %v3439_v0, %v3444_v1  ;;  %vm119_vm0 = vcmask 130048   ;;  %v3537_v19 = vcombine.low %v3459_v4, %v3464_v5  ;;  %s2683_s1 = smul.u32 112, %s3407_s21  ;;  %v3553_v22 = vcombine.low %v3449_v2, %v3454_v3  ;;  %s2740_s25 = sshll.u32 %s3407_s21, 5  ;;  %s3407_s21 = sphi %s3520_s21, %s39_s21   ;;  %v3403_v17 = vphi %v3518_v17, %v4015_v17   ;;  %v3399_v16 = vphi %v3516_v16, %v4014_v16  }
   0x8   : > { %v3558_v24 = vcombine.low %v3469_v6, %v3474_v7  ;;  %v3562_v25 = vcombine.low %v3479_v8, %v3484_v9  ;;  %v3576_v28 = vcombine.low %v3489_v10, %v3494_v11  ;;  %v3580_v29 = vcombine.low %v3499_v12, %v3504_v13  ;;  %s3882_s28 = scalar_lea.vmem %s4011_s2, %s2740_s25  ;;  %s39_s21 = sadd.s32 1, %s3407_s21  }
   0x9   : > { %3058 = vmatprep.mubr.msk.bf16.mxu0 %vm119_vm0, %v3533_v18  ;;  %3080 = vmatprep.mubr.msk.bf16.mxu1 %vm119_vm0, %v3537_v19  ;;  %s3547_s24 = scalar_lea.vmem %s4009_s0, %s2683_s1  ;;  %v3592_v30 = vcombine.low %v3509_v14, %v3514_v15  ;;  %vm2334_vm1 = vcmask 523264   ;;  %p36_p0 = scmp.ge.s32.totalorder %s39_s21, 14  }
   0xa   : > { %v3336_v20 = vld [vmem:[%s3547_s24] sm:$0xff]   ;;  %v3337_v21 = vld [vmem:[%s3547_s24 + $0x8] sm:$0xff]   ;;  %v3338_v23 = vld [vmem:[%s3547_s24 + $0x18] sm:$0xff]  }
   0xb   : > { %3056 = vmatprep.subr.bf16.mxu0 %v3336_v20  ;;  %3308 = vmatprep.subr.bf16.mxu1 %v3337_v21  ;;  %v3339_v26 = vld [vmem:[%s3547_s24 + $0x10] sm:$0xff]   ;;  %v3340_v27 = vld [vmem:[%s3547_s24 + $0x28] sm:$0xff]   ;;  %v3342_v31 = vld [vmem:[%s3547_s24 + $0x38] sm:$0xff]  }
   0xc   : > { %3057 = vmatpush3.bf16.msra.mxu0 %v3336_v20  ;;  %3309 = vmatpush3.bf16.msra.mxu1 %v3337_v21  ;;  %v3341_v32 = vld [vmem:[%s3547_s24 + $0x20] sm:$0xff]   ;;  %v3343_v33 = vld [vmem:[%s3547_s24 + $0x30] sm:$0xff]   ;;  %v3344_v34 = vld [vmem:[%s3547_s24 + $0x48] sm:$0xff]  }
   0xd   : > { %3074 = vmatprep.subr.bf16.mxu0 %v3337_v21  ;;  %3110 = vmatprep.subr.bf16.mxu1 %v3338_v23  ;;  %v3345_v35 = vld [vmem:[%s3547_s24 + $0x40] sm:$0xff]   ;;  %v3346_v36 = vld [vmem:[%s3547_s24 + $0x58] sm:$0xff]   ;;  %v3347_v37 = vld [vmem:[%s3547_s24 + $0x50] sm:$0xff]  }
   0xe   : > { %v3348_v38 = vld [vmem:[%s3547_s24 + $0x68] sm:$0xff]   ;;  %v3349_v39 = vld [vmem:[%s3547_s24 + $0x60] sm:$0xff]  }
   0xf   : > { %3059 = vmatmul.mubr.msk.bf16.vlgmr.msra.gmra.mxu0 %vm119_vm0, %v3553_v22  ;;  %3081 = vmatmul.mubr.msk.bf16.vlgmr.msra.gmra.mxu1 %vm119_vm0, %v3558_v24 }
  0x10   : > { %3075 = vmatpush3.bf16.msra.mxu0 %v3337_v21  ;;  %3062 = vmatprep.mubr.msk.bf16.mxu0 %vm119_vm0, %v3537_v19 }
  0x11   : > { %3084 = vmatprep.mubr.msk.bf16.mxu1 %vm119_vm0, %v3562_v25  ;;  %3111 = vmatpush3.bf16.msra.mxu1 %v3338_v23 }
  0x12   : > { %3092 = vmatprep.subr.bf16.mxu0 %v3339_v26  ;;  %3146 = vmatprep.subr.bf16.mxu1 %v3340_v27 }
  0x17   : > { %3063 = vmatmul.mubr.msk.bf16.gmra.mxu0 %vm119_vm0, %v3558_v24  ;;  %3085 = vmatmul.mubr.msk.bf16.gmra.mxu1 %vm119_vm0, %v3576_v28 }
  0x18   : > { %3066 = vmatprep.mubr.msk.bf16.mxu0 %vm119_vm0, %v3562_v25  ;;  %3088 = vmatprep.mubr.msk.bf16.mxu1 %vm119_vm0, %v3580_v29 }
  0x1f   : > { %3067 = vmatmul.mubr.msk.bf16.gmra.mxu0 %vm119_vm0, %v3576_v28  ;;  %3089 = vmatmul.mubr.msk.bf16.gmra.mxu1 %vm119_vm0, %v3592_v30 }
  0x20   : > { %3070 = vmatprep.mubr.msk.bf16.mxu0 %vm119_vm0, %v3580_v29  ;;  %3112 = vmatprep.mubr.msk.bf16.mxu1 %vm119_vm0, %v3533_v18 }
  0x27   : > { %3071 = vmatmul.mubr.msk.bf16.gmra.mxu0 %vm119_vm0, %v3592_v30  ;;  %3113 = vmatmul.mubr.msk.bf16.vlgmr.msra.gmra.mxu1 %vm119_vm0, %v3553_v22 }
  0x28   : > { %3076 = vmatprep.mubr.msk.bf16.mxu0 %vm119_vm0, %v3533_v18  ;;  %3116 = vmatprep.mubr.msk.bf16.mxu1 %vm119_vm0, %v3537_v19 }
  0x29   : > { %3147 = vmatpush3.bf16.msra.mxu1 %v3340_v27 }
  0x2a   : > { %3182 = vmatprep.subr.bf16.mxu1 %v3342_v31 }
  0x2f   : > { %3077 = vmatmul.mubr.msk.bf16.vlgmr.msra.gmra.mxu0 %vm119_vm0, %v3553_v22  ;;  %3117 = vmatmul.mubr.msk.bf16.gmra.mxu1 %vm119_vm0, %v3558_v24 }
  0x30   : > { %3093 = vmatpush3.bf16.msra.mxu0 %v3339_v26  ;;  %3094 = vmatprep.mubr.msk.bf16.mxu0 %vm119_vm0, %v3533_v18 }
  0x31   : > { %3120 = vmatprep.mubr.msk.bf16.mxu1 %vm119_vm0, %v3562_v25  ;;  %3128 = vmatprep.subr.bf16.mxu0 %v3341_v32 }
  0x37   : > { %3095 = vmatmul.mubr.msk.bf16.vlgmr.msra.gmra.mxu0 %vm119_vm0, %v3553_v22  ;;  %3121 = vmatmul.mubr.msk.bf16.gmra.mxu1 %vm119_vm0, %v3576_v28 }
  0x38   : > { %3129 = vmatpush3.bf16.msra.mxu0 %v3341_v32  ;;  %3098 = vmatprep.mubr.msk.bf16.mxu0 %vm119_vm0, %v3537_v19 }
  0x39   : > { %3124 = vmatprep.mubr.msk.bf16.mxu1 %vm119_vm0, %v3580_v29  ;;  %3164 = vmatprep.subr.bf16.mxu0 %v3343_v33 }
  0x3f   : > { %3099 = vmatmul.mubr.msk.bf16.gmra.mxu0 %vm119_vm0, %v3558_v24  ;;  %3125 = vmatmul.mubr.msk.bf16.gmra.mxu1 %vm119_vm0, %v3592_v30 }
  0x40   : > { %3102 = vmatprep.mubr.msk.bf16.mxu0 %vm119_vm0, %v3562_v25  ;;  %3148 = vmatprep.mubr.msk.bf16.mxu1 %vm119_vm0, %v3533_v18 }
  0x47   : > { %3103 = vmatmul.mubr.msk.bf16.gmra.mxu0 %vm119_vm0, %v3576_v28  ;;  %3149 = vmatmul.mubr.msk.bf16.vlgmr.msra.gmra.mxu1 %vm119_vm0, %v3553_v22 }
  0x48   : > { %3106 = vmatprep.mubr.msk.bf16.mxu0 %vm119_vm0, %v3580_v29  ;;  %3152 = vmatprep.mubr.msk.bf16.mxu1 %vm119_vm0, %v3537_v19 }
  0x49   : > { %3183 = vmatpush3.bf16.msra.mxu1 %v3342_v31 }
  0x4a   : > { %3218 = vmatprep.subr.bf16.mxu1 %v3344_v34 }
  0x4f   : > { %3107 = vmatmul.mubr.msk.bf16.gmra.mxu0 %vm119_vm0, %v3592_v30  ;;  %3153 = vmatmul.mubr.msk.bf16.gmra.mxu1 %vm119_vm0, %v3558_v24 }
  0x50   : > { %3130 = vmatprep.mubr.msk.bf16.mxu0 %vm119_vm0, %v3533_v18  ;;  %3156 = vmatprep.mubr.msk.bf16.mxu1 %vm119_vm0, %v3562_v25 }
  0x57   : > { %3131 = vmatmul.mubr.msk.bf16.vlgmr.msra.gmra.mxu0 %vm119_vm0, %v3553_v22  ;;  %3157 = vmatmul.mubr.msk.bf16.gmra.mxu1 %vm119_vm0, %v3576_v28 }
  0x58   : > { %3165 = vmatpush3.bf16.msra.mxu0 %v3343_v33  ;;  %3134 = vmatprep.mubr.msk.bf16.mxu0 %vm119_vm0, %v3537_v19 }
  0x59   : > { %3160 = vmatprep.mubr.msk.bf16.mxu1 %vm119_vm0, %v3580_v29  ;;  %3200 = vmatprep.subr.bf16.mxu0 %v3345_v35 }
  0x5f   : > { %3135 = vmatmul.mubr.msk.bf16.gmra.mxu0 %vm119_vm0, %v3558_v24  ;;  %3161 = vmatmul.mubr.msk.bf16.gmra.mxu1 %vm119_vm0, %v3592_v30 }
  0x60   : > { %3138 = vmatprep.mubr.msk.bf16.mxu0 %vm119_vm0, %v3562_v25  ;;  %3184 = vmatprep.mubr.msk.bf16.mxu1 %vm119_vm0, %v3533_v18 }
  0x67   : > { %3139 = vmatmul.mubr.msk.bf16.gmra.mxu0 %vm119_vm0, %v3576_v28  ;;  %3185 = vmatmul.mubr.msk.bf16.vlgmr.msra.gmra.mxu1 %vm119_vm0, %v3553_v22 }
  0x68   : > { %3142 = vmatprep.mubr.msk.bf16.mxu0 %vm119_vm0, %v3580_v29  ;;  %3188 = vmatprep.mubr.msk.bf16.mxu1 %vm119_vm0, %v3537_v19 }
  0x69   : > { %3219 = vmatpush3.bf16.msra.mxu1 %v3344_v34 }
  0x6a   : > { %3254 = vmatprep.subr.bf16.mxu1 %v3346_v36 }
  0x6f   : > { %3143 = vmatmul.mubr.msk.bf16.gmra.mxu0 %vm119_vm0, %v3592_v30  ;;  %3189 = vmatmul.mubr.msk.bf16.gmra.mxu1 %vm119_vm0, %v3558_v24 }
  0x70   : > { %3166 = vmatprep.mubr.msk.bf16.mxu0 %vm119_vm0, %v3533_v18  ;;  %3192 = vmatprep.mubr.msk.bf16.mxu1 %vm119_vm0, %v3562_v25 }
  0x77   : > { %3167 = vmatmul.mubr.msk.bf16.vlgmr.msra.gmra.mxu0 %vm119_vm0, %v3553_v22  ;;  %3193 = vmatmul.mubr.msk.bf16.gmra.mxu1 %vm119_vm0, %v3576_v28 }
  0x78   : > { %3201 = vmatpush3.bf16.msra.mxu0 %v3345_v35  ;;  %3170 = vmatprep.mubr.msk.bf16.mxu0 %vm119_vm0, %v3537_v19 }
  0x79   : > { %3196 = vmatprep.mubr.msk.bf16.mxu1 %vm119_vm0, %v3580_v29  ;;  %3236 = vmatprep.subr.bf16.mxu0 %v3347_v37 }
  0x7f   : > { %3171 = vmatmul.mubr.msk.bf16.gmra.mxu0 %vm119_vm0, %v3558_v24  ;;  %3197 = vmatmul.mubr.msk.bf16.gmra.mxu1 %vm119_vm0, %v3592_v30 }
  0x80   : > { %3174 = vmatprep.mubr.msk.bf16.mxu0 %vm119_vm0, %v3562_v25  ;;  %3220 = vmatprep.mubr.msk.bf16.mxu1 %vm119_vm0, %v3533_v18 }
  0x87   : > { %3175 = vmatmul.mubr.msk.bf16.gmra.mxu0 %vm119_vm0, %v3576_v28  ;;  %3221 = vmatmul.mubr.msk.bf16.vlgmr.msra.gmra.mxu1 %vm119_vm0, %v3553_v22 }
  0x88   : > { %3178 = vmatprep.mubr.msk.bf16.mxu0 %vm119_vm0, %v3580_v29  ;;  %3224 = vmatprep.mubr.msk.bf16.mxu1 %vm119_vm0, %v3537_v19 }
  0x89   : > { %3255 = vmatpush3.bf16.msra.mxu1 %v3346_v36 }
  0x8a   : > { %3290 = vmatprep.subr.bf16.mxu1 %v3348_v38 }
  0x8f   : > { %3179 = vmatmul.mubr.msk.bf16.gmra.mxu0 %vm119_vm0, %v3592_v30  ;;  %3225 = vmatmul.mubr.msk.bf16.gmra.mxu1 %vm119_vm0, %v3558_v24 }
  0x90   : > { %3202 = vmatprep.mubr.msk.bf16.mxu0 %vm119_vm0, %v3533_v18  ;;  %3228 = vmatprep.mubr.msk.bf16.mxu1 %vm119_vm0, %v3562_v25 }
  0x97   : > { %3203 = vmatmul.mubr.msk.bf16.vlgmr.msra.gmra.mxu0 %vm119_vm0, %v3553_v22  ;;  %3229 = vmatmul.mubr.msk.bf16.gmra.mxu1 %vm119_vm0, %v3576_v28 }
  0x98   : > { %3237 = vmatpush3.bf16.msra.mxu0 %v3347_v37  ;;  %3206 = vmatprep.mubr.msk.bf16.mxu0 %vm119_vm0, %v3537_v19 }
  0x99   : > { %3232 = vmatprep.mubr.msk.bf16.mxu1 %vm119_vm0, %v3580_v29  ;;  %3272 = vmatprep.subr.bf16.mxu0 %v3349_v39 }
  0x9f   : > { %3207 = vmatmul.mubr.msk.bf16.gmra.mxu0 %vm119_vm0, %v3558_v24  ;;  %3233 = vmatmul.mubr.msk.bf16.gmra.mxu1 %vm119_vm0, %v3592_v30 }
  0xa0   : > { %3210 = vmatprep.mubr.msk.bf16.mxu0 %vm119_vm0, %v3562_v25  ;;  %3256 = vmatprep.mubr.msk.bf16.mxu1 %vm119_vm0, %v3533_v18 }
  0xa7   : > { %3211 = vmatmul.mubr.msk.bf16.gmra.mxu0 %vm119_vm0, %v3576_v28  ;;  %3257 = vmatmul.mubr.msk.bf16.vlgmr.msra.gmra.mxu1 %vm119_vm0, %v3553_v22 }
  0xa8   : > { %3214 = vmatprep.mubr.msk.bf16.mxu0 %vm119_vm0, %v3580_v29  ;;  %3260 = vmatprep.mubr.msk.bf16.mxu1 %vm119_vm0, %v3537_v19 }
  0xa9   : > { %3291 = vmatpush3.bf16.msra.mxu1 %v3348_v38 }
  0xaf   : > { %3215 = vmatmul.mubr.msk.bf16.gmra.mxu0 %vm119_vm0, %v3592_v30  ;;  %3261 = vmatmul.mubr.msk.bf16.gmra.mxu1 %vm119_vm0, %v3558_v24 }
  0xb0   : > { %3238 = vmatprep.mubr.msk.bf16.mxu0 %vm119_vm0, %v3533_v18  ;;  %3264 = vmatprep.mubr.msk.bf16.mxu1 %vm119_vm0, %v3562_v25 }
  0xb7   : > { %3239 = vmatmul.mubr.msk.bf16.vlgmr.msra.gmra.mxu0 %vm119_vm0, %v3553_v22  ;;  %3265 = vmatmul.mubr.msk.bf16.gmra.mxu1 %vm119_vm0, %v3576_v28 }
  0xb8   : > { %3273 = vmatpush3.bf16.msra.mxu0 %v3349_v39  ;;  %3242 = vmatprep.mubr.msk.bf16.mxu0 %vm119_vm0, %v3537_v19 }
  0xb9   : > { %3268 = vmatprep.mubr.msk.bf16.mxu1 %vm119_vm0, %v3580_v29 }
  0xbf   : > { %3243 = vmatmul.mubr.msk.bf16.gmra.mxu0 %vm119_vm0, %v3558_v24  ;;  %3269 = vmatmul.mubr.msk.bf16.gmra.mxu1 %vm119_vm0, %v3592_v30 }
  0xc0   : > { %3246 = vmatprep.mubr.msk.bf16.mxu0 %vm119_vm0, %v3562_v25  ;;  %3292 = vmatprep.mubr.msk.bf16.mxu1 %vm119_vm0, %v3533_v18 }
  0xc7   : > { %3247 = vmatmul.mubr.msk.bf16.gmra.mxu0 %vm119_vm0, %v3576_v28  ;;  %3293 = vmatmul.mubr.msk.bf16.vlgmr.msra.gmra.mxu1 %vm119_vm0, %v3553_v22 }
  0xc8   : > { %3250 = vmatprep.mubr.msk.bf16.mxu0 %vm119_vm0, %v3580_v29  ;;  %3296 = vmatprep.mubr.msk.bf16.mxu1 %vm119_vm0, %v3537_v19 }
  0xcf   : > { %v3060_v40 = vpop.f32.mrf.mxu0  ;;  %3251 = vmatmul.mubr.msk.bf16.gmra.mxu0 %vm119_vm0, %v3592_v30  ;;  %v3781_v41 = vpop.f32.mrf.mxu1  ;;  %3297 = vmatmul.mubr.msk.bf16.gmra.mxu1 %vm119_vm0, %v3558_v24 }
  0xd0   : > { %3274 = vmatprep.mubr.msk.bf16.mxu0 %vm119_vm0, %v3533_v18  ;;  %3300 = vmatprep.mubr.msk.bf16.mxu1 %vm119_vm0, %v3562_v25 }
  0xd1   : > { %v178_v42 = vpop.f32.mrf.mxu0  ;;  %v3789_v43 = vpop.f32.mrf.mxu1 }
  0xd3   : > { %v3061_v44 = vpop.f32.mrf.mxu0  ;;  %v3791_v45 = vpop.f32.mrf.mxu1 }
  0xd5   : > { %v181_v46 = vpop.f32.mrf.mxu0  ;;  %v3793_v47 = vpop.f32.mrf.mxu1 }
  0xd7   : > { %v3064_v48 = vpop.f32.mrf.mxu0  ;;  %3275 = vmatmul.mubr.msk.bf16.vlgmr.msra.gmra.mxu0 %vm119_vm0, %v3553_v22  ;;  %v3086_v49 = vpop.f32.mrf.mxu1  ;;  %3301 = vmatmul.mubr.msk.bf16.gmra.mxu1 %vm119_vm0, %v3576_v28 }
  0xd8   : > { %3278 = vmatprep.mubr.msk.bf16.mxu0 %vm119_vm0, %v3537_v19  ;;  %3304 = vmatprep.mubr.msk.bf16.mxu1 %vm119_vm0, %v3580_v29  ;;  %v243_v22 = vmax.f32 %v3060_v40, %v3064_v48 }
  0xd9   : > { %v194_v50 = vpop.f32.mrf.mxu0  ;;  %v3803_v51 = vpop.f32.mrf.mxu1 }
  0xda   : > { %v241_v26 = vmax.f32 %v178_v42, %v194_v50 }
  0xdb   : > { %v3065_v52 = vpop.f32.mrf.mxu0  ;;  %v3087_v53 = vpop.f32.mrf.mxu1 }
  0xdc   : > { %v244_v27 = vmax.f32 %v3061_v44, %v3065_v52 }
  0xdd   : > { %v197_v54 = vpop.f32.mrf.mxu0  ;;  %v3805_v55 = vpop.f32.mrf.mxu1 }
  0xdf   : > { %v3068_v56 = vpop.f32.mrf.mxu0  ;;  %3279 = vmatmul.mubr.msk.bf16.gmra.mxu0 %vm119_vm0, %v3558_v24  ;;  %v3090_v57 = vpop.f32.mrf.mxu1  ;;  %3305 = vmatmul.mubr.msk.bf16.gmra.mxu1 %vm119_vm0, %v3592_v30 }
  0xe0   : > { %3282 = vmatprep.mubr.msk.bf16.mxu0 %vm119_vm0, %v3562_v25  ;;  %v386_v50 = vmax.f32 %v3086_v49, %v3090_v57 }
  0xe1   : > { %v210_v58 = vpop.f32.mrf.mxu0  ;;  %v365_v59 = vpop.f32.mrf.mxu1 }
  0xe3   : > { %v3069_v60 = vpop.f32.mrf.mxu0  ;;  %v3091_v61 = vpop.f32.mrf.mxu1 }
  0xe5   : > { %v213_v62 = vpop.f32.mrf.mxu0  ;;  %v368_v63 = vpop.f32.mrf.mxu1 }
  0xe6   : > { %v385_v49 = vmax.f32 %v3805_v55, %v368_v63 }
  0xe7   : > { %v3072_v18 = vpop.f32.mrf.mxu0  ;;  %3283 = vmatmul.mubr.msk.bf16.gmra.mxu0 %vm119_vm0, %v3576_v28  ;;  %v3815_v20 = vpop.f32.mrf.mxu1  ;;  %v242_v28 = vmax.f32 %v181_v46, %v197_v54 }
  0xe8   : > { %v247_v19 = vmax.f32 %v3068_v56, %v3072_v18  ;;  %3286 = vmatprep.mubr.msk.bf16.mxu0 %vm119_vm0, %v3580_v29 }
  0xe9   : > { %v226_v21 = vpop.f32.mrf.mxu0  ;;  %v3819_v24 = vpop.f32.mrf.mxu1 }
  0xea   : > { %v245_v23 = vmax.f32 %v210_v58, %v226_v21  ;;  %v251_v31 = vmax.f32 %v243_v22, %v247_v19  ;;  %v387_v19 = vmax.f32 %v3087_v53, %v3091_v61 }
  0xeb   : > { %v3073_v25 = vpop.f32.mrf.mxu0  ;;  %v3821_v33 = vpop.f32.mrf.mxu1 }
  0xec   : > { %v248_v32 = vmax.f32 %v3069_v60, %v3073_v25  ;;  %v249_v35 = vmax.f32 %v241_v26, %v245_v23  ;;  %v255_v39 = vmax.f32 %v251_v31, 0.0 }
  0xed   : > { %v229_v34 = vpop.f32.mrf.mxu0  ;;  %v3823_v38 = vpop.f32.mrf.mxu1 }
  0xee   : > { %v252_v36 = vmax.f32 %v244_v27, %v248_v32  ;;  %v246_v37 = vmax.f32 %v213_v62, %v229_v34  ;;  %v253_v56 = vmax.f32 %v249_v35, 0.0  ;;  %v384_v62 = vmax.f32 %v3803_v51, %v365_v59 }
  0xef   : > { %v3078_v29 = vpop.f32.mrf.mxu0  ;;  %3287 = vmatmul.mubr.msk.bf16.gmra.mxu0 %vm119_vm0, %v3592_v30  ;;  %v3118_v44 = vpop.f32.mrf.mxu1 }
  0xf0   : > { %v256_v40 = vmax.f32 %v252_v36, 0.0  ;;  %v250_v48 = vmax.f32 %v242_v28, %v246_v37  ;;  %v382_v42 = vmax.f32 %v3078_v29, %v3781_v41 }
  0xf1   : > { %v317_v52 = vpop.f32.mrf.mxu0  ;;  %v611_v60 = vpop.f32.mrf.mxu1 }
  0xf2   : > { %v2749_v58 = vpack.c.bf16 %v256_v40, %v255_v39  ;;  %v254_v46 = vmax.f32 %v250_v48, 0.0  ;;  %v380_v54 = vmax.f32 %v317_v52, %v3789_v43  ;;  %v390_v21 = vmax.f32 %v382_v42, %v386_v50 }
  0xf3   : > { %v3079_v18 = vpop.f32.mrf.mxu0  ;;  %v3119_v23 = vpop.f32.mrf.mxu1  ;;  %v660_v42 = vmax.f32 %v3815_v20, %v3118_v44 }
  0xf4   : > { %2881 = vst [vmem:[#allocation2 + $0x8] sm:$0xff] %v2749_v58   ;;  %v2744_v30 = vpack.c.bf16 %v254_v46, %v253_v56  ;;  %v383_v22 = vmax.f32 %v3079_v18, %v3791_v45  ;;  %v388_v57 = vmax.f32 %v380_v54, %v384_v62  ;;  %v394_v51 = vmax.f32 %v390_v21, 0.0 }
  0xf5   : > { %v320_v41 = vpop.f32.mrf.mxu0  ;;  %v614_v43 = vpop.f32.mrf.mxu1  ;;  %v658_v58 = vmax.f32 %v3819_v24, %v611_v60  ;;  %v661_v46 = vmax.f32 %v3821_v33, %v3119_v23 }
  0xf6   : > { %2745 = vst [vmem:[#allocation2] sm:$0xff] %v2744_v30   ;;  %v391_v25 = vmax.f32 %v383_v22, %v387_v19  ;;  %v381_v26 = vmax.f32 %v320_v41, %v3793_v47  ;;  %v392_v32 = vmax.f32 %v388_v57, 0.0  ;;  %v659_v30 = vmax.f32 %v3823_v38, %v614_v43 }
  0xf7   : > { %v3833_v27 = vpop.f32.mrf.mxu0  ;;  %v3122_v61 = vpop.f32.mrf.mxu1 }
  0xf8   : > { %v395_v59 = vmax.f32 %v391_v25, 0.0  ;;  %v389_v53 = vmax.f32 %v381_v26, %v385_v49 }
  0xf9   : > { %v3835_v31 = vpop.f32.mrf.mxu0  ;;  %v627_v28 = vpop.f32.mrf.mxu1 }
  0xfa   : > { %v2759_v45 = vpack.c.bf16 %v395_v59, %v394_v51  ;;  %v393_v34 = vmax.f32 %v389_v53, 0.0 }
  0xfb   : > { %v3097_v35 = vpop.f32.mrf.mxu0  ;;  %v3123_v63 = vpop.f32.mrf.mxu1 }
  0xfc   : > { %2883 = vst [vmem:[#allocation2 + $0x18] sm:$0xff] %v2759_v45   ;;  %v2754_v55 = vpack.c.bf16 %v393_v34, %v392_v32 }
  0xfd   : > { %v3837_v36 = vpop.f32.mrf.mxu0  ;;  %v630_v47 = vpop.f32.mrf.mxu1 }
  0xfe   : > { %2882 = vst [vmem:[#allocation2 + $0x10] sm:$0xff] %v2754_v55  }
  0xff   : > { %v3100_v37 = vpop.f32.mrf.mxu0  ;;  %v3126_v29 = vpop.f32.mrf.mxu1 }
 0x100   : > { %v664_v39 = vmax.f32 %v3122_v61, %v3126_v29 }
 0x101   : > { %v472_v40 = vpop.f32.mrf.mxu0  ;;  %v643_v48 = vpop.f32.mrf.mxu1 }
 0x102   : > { %v662_v50 = vmax.f32 %v627_v28, %v643_v48  ;;  %v668_v54 = vmax.f32 %v660_v42, %v664_v39  ;;  %v521_v28 = vmax.f32 %v3833_v27, %v3100_v37  ;;  %v519_v29 = vmax.f32 %v3835_v31, %v472_v40 }
 0x103   : > { %v3101_v52 = vpop.f32.mrf.mxu0  ;;  %v3127_v56 = vpop.f32.mrf.mxu1 }
 0x104   : > { %v665_v62 = vmax.f32 %v3123_v63, %v3127_v56  ;;  %v666_v21 = vmax.f32 %v658_v58, %v662_v50  ;;  %v672_v20 = vmax.f32 %v668_v54, 0.0  ;;  %v522_v39 = vmax.f32 %v3097_v35, %v3101_v52 }
 0x105   : > { %v475_v18 = vpop.f32.mrf.mxu0  ;;  %v646_v19 = vpop.f32.mrf.mxu1 }
 0x106   : > { %v669_v22 = vmax.f32 %v661_v46, %v665_v62  ;;  %v663_v41 = vmax.f32 %v630_v47, %v646_v19  ;;  %v670_v24 = vmax.f32 %v666_v21, 0.0  ;;  %v520_v58 = vmax.f32 %v3837_v36, %v475_v18 }
 0x107   : > { %v3104_v49 = vpop.f32.mrf.mxu0  ;;  %v3843_v57 = vpop.f32.mrf.mxu1 }
 0x108   : > { %v673_v44 = vmax.f32 %v669_v22, 0.0  ;;  %v667_v25 = vmax.f32 %v659_v30, %v663_v41  ;;  %v3409_v30 = vmov 0  }
 0x109   : > { %v488_v26 = vpop.f32.mrf.mxu0  ;;  %v3845_v51 = vpop.f32.mrf.mxu1  ;;  %2379 = vmatprep.subr.bf16.mxu1 %v3409_v30 }
 0x10a   : > { %v2779_v33 = vpack.c.bf16 %v673_v44, %v672_v20  ;;  %v671_v60 = vmax.f32 %v667_v25, 0.0 }
 0x10b   : > { %v3105_v23 = vpop.f32.mrf.mxu0  ;;  %v3151_v59 = vpop.f32.mrf.mxu1 }
 0x10c   : > { %2887 = vst [vmem:[#allocation2 + $0x38] sm:$0xff] %v2779_v33   ;;  %v2774_v53 = vpack.c.bf16 %v671_v60, %v670_v24 }
 0x10d   : > { %v491_v38 = vpop.f32.mrf.mxu0  ;;  %v3847_v43 = vpop.f32.mrf.mxu1 }
 0x10e   : > { %2886 = vst [vmem:[#allocation2 + $0x30] sm:$0xff] %v2774_v53  }
 0x10f   : > { %v3108_v61 = vpop.f32.mrf.mxu0  ;;  %v3154_v45 = vpop.f32.mrf.mxu1 }
 0x110   : > { %v525_v32 = vmax.f32 %v3104_v49, %v3108_v61  ;;  %v938_v53 = vmax.f32 %v3843_v57, %v3154_v45 }
 0x111   : > { %v504_v34 = vpop.f32.mrf.mxu0  ;;  %v889_v63 = vpop.f32.mrf.mxu1 }
 0x112   : > { %v523_v55 = vmax.f32 %v488_v26, %v504_v34  ;;  %v529_v48 = vmax.f32 %v521_v28, %v525_v32  ;;  %v936_v34 = vmax.f32 %v3845_v51, %v889_v63 }
 0x113   : > { %v3109_v47 = vpop.f32.mrf.mxu0  ;;  %v3155_v50 = vpop.f32.mrf.mxu1 }
 0x114   : > { %v526_v42 = vmax.f32 %v3105_v23, %v3109_v47  ;;  %v527_v46 = vmax.f32 %v519_v29, %v523_v55  ;;  %v533_v37 = vmax.f32 %v529_v48, 0.0  ;;  %v939_v28 = vmax.f32 %v3151_v59, %v3155_v50 }
 0x115   : > { %v507_v56 = vpop.f32.mrf.mxu0  ;;  %v892_v19 = vpop.f32.mrf.mxu1 }
 0x116   : > { %v530_v54 = vmax.f32 %v522_v39, %v526_v42  ;;  %v524_v62 = vmax.f32 %v491_v38, %v507_v56  ;;  %v531_v40 = vmax.f32 %v527_v46, 0.0  ;;  %v937_v48 = vmax.f32 %v3847_v43, %v892_v19 }
 0x117   : > { %v3853_v27 = vpop.f32.mrf.mxu0  ;;  %v3158_v31 = vpop.f32.mrf.mxu1 }
 0x118   : > { %v534_v21 = vmax.f32 %v530_v54, 0.0  ;;  %v528_v22 = vmax.f32 %v520_v58, %v524_v62 }
 0x119   : > { %v3855_v35 = vpop.f32.mrf.mxu0  ;;  %v905_v49 = vpop.f32.mrf.mxu1 }
 0x11a   : > { %v2769_v52 = vpack.c.bf16 %v534_v21, %v533_v37  ;;  %v532_v41 = vmax.f32 %v528_v22, 0.0 }
 0x11b   : > { %v3133_v36 = vpop.f32.mrf.mxu0  ;;  %v3159_v20 = vpop.f32.mrf.mxu1 }
 0x11c   : > { %2885 = vst [vmem:[#allocation2 + $0x28] sm:$0xff] %v2769_v52   ;;  %v2764_v18 = vpack.c.bf16 %v532_v41, %v531_v40 }
 0x11d   : > { %v737_v44 = vpop.f32.mrf.mxu0  ;;  %v908_v25 = vpop.f32.mrf.mxu1 }
 0x11e   : > { %2884 = vst [vmem:[#allocation2 + $0x20] sm:$0xff] %v2764_v18  }
 0x11f   : > { %v3136_v26 = vpop.f32.mrf.mxu0  ;;  %v3162_v24 = vpop.f32.mrf.mxu1 }
 0x120   : > { %v942_v33 = vmax.f32 %v3158_v31, %v3162_v24  ;;  %v799_v18 = vmax.f32 %v3853_v27, %v3136_v26 }
 0x121   : > { %v750_v60 = vpop.f32.mrf.mxu0  ;;  %v921_v23 = vpop.f32.mrf.mxu1 }
 0x122   : > { %v940_v38 = vmax.f32 %v905_v49, %v921_v23  ;;  %v946_v55 = vmax.f32 %v938_v53, %v942_v33  ;;  %v797_v33 = vmax.f32 %v3855_v35, %v750_v60 }
 0x123   : > { %v3137_v61 = vpop.f32.mrf.mxu0  ;;  %v3163_v32 = vpop.f32.mrf.mxu1 }
 0x124   : > { %v943_v47 = vmax.f32 %v3159_v20, %v3163_v32  ;;  %v944_v42 = vmax.f32 %v936_v34, %v940_v38  ;;  %v950_v62 = vmax.f32 %v946_v55, 0.0  ;;  %v800_v23 = vmax.f32 %v3133_v36, %v3137_v61 }
 0x125   : > { %v753_v29 = vpop.f32.mrf.mxu0  ;;  %v924_v39 = vpop.f32.mrf.mxu1 }
 0x126   : > { %v947_v56 = vmax.f32 %v939_v28, %v943_v47  ;;  %v941_v58 = vmax.f32 %v908_v25, %v924_v39  ;;  %v948_v51 = vmax.f32 %v944_v42, 0.0  ;;  %v798_v28 = vmax.f32 %v737_v44, %v753_v29 }
 0x127   : > { %v3140_v46 = vpop.f32.mrf.mxu0  ;;  %v3860_v54 = vpop.f32.mrf.mxu1 }
 0x128   : > { %v951_v57 = vmax.f32 %v947_v56, 0.0  ;;  %v945_v45 = vmax.f32 %v937_v48, %v941_v58 }
 0x129   : > { %v766_v37 = vpop.f32.mrf.mxu0  ;;  %v3862_v21 = vpop.f32.mrf.mxu1 }
 0x12a   : > { %v2799_v59 = vpack.c.bf16 %v951_v57, %v950_v62  ;;  %v949_v63 = vmax.f32 %v945_v45, 0.0 }
 0x12b   : > { %v3141_v50 = vpop.f32.mrf.mxu0  ;;  %v3864_v22 = vpop.f32.mrf.mxu1 }
 0x12c   : > { %2891 = vst [vmem:[#allocation2 + $0x58] sm:$0xff] %v2799_v59   ;;  %v2794_v43 = vpack.c.bf16 %v949_v63, %v948_v51  ;;  %v3378_v59 = vld [vmem:[%s3882_s28 + $0x4] ss:$16 sps:$4 sm:$0x1f]  }
 0x12d   : > { %v769_v19 = vpop.f32.mrf.mxu0  ;;  %v3866_v31 = vpop.f32.mrf.mxu1  ;;  %2370 = vmatprep.mubr.bf16.mxu0 %v3378_v59 }
 0x12e   : > { %2890 = vst [vmem:[#allocation2 + $0x50] sm:$0xff] %v2794_v43  }
 0x12f   : > { %v3144_v40 = vpop.f32.mrf.mxu0  ;;  %v3190_v41 = vpop.f32.mrf.mxu1 }
 0x130   : > { %v803_v52 = vmax.f32 %v3140_v46, %v3144_v40 }
 0x131   : > { %v782_v49 = vpop.f32.mrf.mxu0  ;;  %v1167_v25 = vpop.f32.mrf.mxu1 }
 0x132   : > { %v801_v20 = vmax.f32 %v766_v37, %v782_v49  ;;  %v807_v53 = vmax.f32 %v799_v18, %v803_v52  ;;  %v1214_v18 = vmax.f32 %v3862_v21, %v1167_v25 }
 0x133   : > { %v3145_v24 = vpop.f32.mrf.mxu0  ;;  %v3191_v32 = vpop.f32.mrf.mxu1 }
 0x134   : > { %v804_v38 = vmax.f32 %v3141_v50, %v3145_v24  ;;  %v805_v55 = vmax.f32 %v797_v33, %v801_v20  ;;  %v811_v56 = vmax.f32 %v807_v53, 0.0  ;;  %v1217_v20 = vmax.f32 %v3864_v22, %v3191_v32  ;;  %v3383_v22 = vld [vmem:[%s3882_s28 + $0xc] ss:$16 sps:$4 sm:$0x1f]  }
 0x135   : > { %v785_v34 = vpop.f32.mrf.mxu0  ;;  %v1170_v48 = vpop.f32.mrf.mxu1  ;;  %2682 = vmatprep.mubr.msk.bf16.mxu1 %vm2334_vm1, %v3383_v22 }
 0x136   : > { %v808_v47 = vmax.f32 %v800_v23, %v804_v38  ;;  %v802_v39 = vmax.f32 %v769_v19, %v785_v34  ;;  %v809_v35 = vmax.f32 %v805_v55, 0.0  ;;  %v1216_v19 = vmax.f32 %v3860_v54, %v3190_v41 }
 0x137   : > { %v3870_v42 = vpop.f32.mrf.mxu0  ;;  %v3194_v58 = vpop.f32.mrf.mxu1  ;;  %v1215_v38 = vmax.f32 %v3866_v31, %v1170_v48 }
 0x138   : > { %v812_v27 = vmax.f32 %v808_v47, 0.0  ;;  %v806_v26 = vmax.f32 %v798_v28, %v802_v39 }
 0x139   : > { %v3872_v46 = vpop.f32.mrf.mxu0  ;;  %v1183_v61 = vpop.f32.mrf.mxu1 }
 0x13a   : > { %v2789_v36 = vpack.c.bf16 %v812_v27, %v811_v56  ;;  %v810_v60 = vmax.f32 %v806_v26, 0.0 }
 0x13b   : > { %v3874_v62 = vpop.f32.mrf.mxu0  ;;  %v3195_v29 = vpop.f32.mrf.mxu1 }
 0x13c   : > { %2889 = vst [vmem:[#allocation2 + $0x48] sm:$0xff] %v2789_v36   ;;  %v2784_v44 = vpack.c.bf16 %v810_v60, %v809_v35 }
 0x13d   : > { %v3876_v57 = vpop.f32.mrf.mxu0  ;;  %v1186_v45 = vpop.f32.mrf.mxu1 }
 0x13e   : > { %2888 = vst [vmem:[#allocation2 + $0x40] sm:$0xff] %v2784_v44  }
 0x13f   : > { %v3172_v37 = vpop.f32.mrf.mxu0  ;;  %v3198_v51 = vpop.f32.mrf.mxu1 }
 0x140   : > { %v1220_v63 = vmax.f32 %v3194_v58, %v3198_v51 }
 0x141   : > { %v1028_v50 = vpop.f32.mrf.mxu0  ;;  %v1199_v43 = vpop.f32.mrf.mxu1 }
 0x142   : > { %v1218_v40 = vmax.f32 %v1183_v61, %v1199_v43  ;;  %v1224_v24 = vmax.f32 %v1216_v19, %v1220_v63  ;;  %v1075_v43 = vmax.f32 %v3872_v46, %v1028_v50 }
 0x143   : > { %v3173_v52 = vpop.f32.mrf.mxu0  ;;  %v3199_v49 = vpop.f32.mrf.mxu1 }
 0x144   : > { %v1221_v33 = vmax.f32 %v3195_v29, %v3199_v49  ;;  %v1222_v34 = vmax.f32 %v1214_v18, %v1218_v40  ;;  %v1228_v54 = vmax.f32 %v1224_v24, 0.0  ;;  %v1078_v19 = vmax.f32 %v3874_v62, %v3173_v52 }
 0x145   : > { %v1031_v23 = vpop.f32.mrf.mxu0  ;;  %v1202_v53 = vpop.f32.mrf.mxu1 }
 0x146   : > { %v1225_v28 = vmax.f32 %v1217_v20, %v1221_v33  ;;  %v1219_v55 = vmax.f32 %v1186_v45, %v1202_v53  ;;  %v1226_v25 = vmax.f32 %v1222_v34, 0.0  ;;  %v1077_v45 = vmax.f32 %v3870_v42, %v3172_v37  ;;  %v3351_v33 = vld [vmem:[#allocation2 + $0x38] sm:$0xff]  }
 0x147   : > { %v3176_v47 = vpop.f32.mrf.mxu0  ;;  %v3889_v39 = vpop.f32.mrf.mxu1  ;;  %v1076_v53 = vmax.f32 %v3876_v57, %v1031_v23 }
 0x148   : > { %v1229_v41 = vmax.f32 %v1225_v28, 0.0  ;;  %v1223_v56 = vmax.f32 %v1215_v38, %v1219_v55 }
 0x149   : > { %v1044_v27 = vpop.f32.mrf.mxu0  ;;  %v3891_v21 = vpop.f32.mrf.mxu1 }
 0x14a   : > { %v2819_v32 = vpack.c.bf16 %v1229_v41, %v1228_v54  ;;  %v1227_v26 = vmax.f32 %v1223_v56, 0.0  ;;  %v3353_v54 = vld [vmem:[#allocation2 + $0x30] sm:$0xff]  }
 0x14b   : > { %v3177_v58 = vpop.f32.mrf.mxu0  ;;  %v3894_v35 = vpop.f32.mrf.mxu1 }
 0x14c   : > { %2895 = vst [vmem:[#allocation2 + $0x78] sm:$0xff] %v2819_v32   ;;  %v2814_v31 = vpack.c.bf16 %v1227_v26, %v1226_v25 }
 0x14d   : > { %v1047_v48 = vpop.f32.mrf.mxu0  ;;  %v3896_v36 = vpop.f32.mrf.mxu1 }
 0x14e   : > { %2894 = vst [vmem:[#allocation2 + $0x70] sm:$0xff] %v2814_v31  }
 0x14f   : > { %v3180_v60 = vpop.f32.mrf.mxu0  ;;  %v3226_v44 = vpop.f32.mrf.mxu1 }
 0x150   : > { %v1081_v61 = vmax.f32 %v3176_v47, %v3180_v60 }
 0x151   : > { %v1060_v29 = vpop.f32.mrf.mxu0  ;;  %v1445_v59 = vpop.f32.mrf.mxu1 }
 0x152   : > { %v1079_v51 = vmax.f32 %v1044_v27, %v1060_v29  ;;  %v1085_v40 = vmax.f32 %v1077_v45, %v1081_v61  ;;  %v1494_v29 = vmax.f32 %v3889_v39, %v3226_v44 }
 0x153   : > { %v3181_v63 = vpop.f32.mrf.mxu0  ;;  %v3227_v18 = vpop.f32.mrf.mxu1  ;;  %v3350_v20 = vld [vmem:[#allocation2 + $0x78] sm:$0xff]  }
 0x154   : > { %v1082_v49 = vmax.f32 %v3177_v58, %v3181_v63  ;;  %v1083_v38 = vmax.f32 %v1075_v43, %v1079_v51  ;;  %3034 = vmatprep.subr.bf16.mxu0 %v3350_v20  ;;  %v1089_v46 = vmax.f32 %v1085_v40, 0.0  ;;  %v1492_v40 = vmax.f32 %v3891_v21, %v1445_v59  ;;  %v3357_v21 = vld [vmem:[#allocation2 + $0x20] sm:$0xff]  }
 0x155   : > { %v1063_v24 = vpop.f32.mrf.mxu0  ;;  %v1448_v55 = vpop.f32.mrf.mxu1  ;;  %v3352_v42 = vld [vmem:[#allocation2 + $0x70] sm:$0xff]   ;;  %3035 = vmatpush3.bf16.msra.mxu0 %v3351_v33 }
 0x156   : > { %v1086_v34 = vmax.f32 %v1078_v19, %v1082_v49  ;;  %v1080_v28 = vmax.f32 %v1047_v48, %v1063_v24  ;;  %3036 = vmatprep.subr.bf16.mxu0 %v3352_v42  ;;  %v1087_v41 = vmax.f32 %v1083_v38, 0.0  ;;  %v3355_v19 = vld [vmem:[#allocation2 + $0x28] sm:$0xff]   ;;  %v1495_v49 = vmax.f32 %v3894_v35, %v3227_v18 }
 0x157   : > { %v3902_v37 = vpop.f32.mrf.mxu0  ;;  %v3230_v52 = vpop.f32.mrf.mxu1  ;;  %v1493_v39 = vmax.f32 %v3896_v36, %v1448_v55 }
 0x158   : > { %v1090_v50 = vmax.f32 %v1086_v34, 0.0  ;;  %v1084_v62 = vmax.f32 %v1076_v53, %v1080_v28 }
 0x159   : > { %v3904_v47 = vpop.f32.mrf.mxu0  ;;  %v1461_v23 = vpop.f32.mrf.mxu1  ;;  %3037 = vmatpush3.bf16.msra.mxu0 %v3353_v54 }
 0x15a   : > { %v2809_v56 = vpack.c.bf16 %v1090_v50, %v1089_v46  ;;  %v1088_v57 = vmax.f32 %v1084_v62, 0.0  ;;  %v3358_v62 = vld [vmem:[#allocation2 + $0x58] sm:$0xff]  }
 0x15b   : > { %v3906_v27 = vpop.f32.mrf.mxu0  ;;  %v3231_v25 = vpop.f32.mrf.mxu1 }
 0x15c   : > { %2893 = vst [vmem:[#allocation2 + $0x68] sm:$0xff] %v2809_v56   ;;  %v2804_v22 = vpack.c.bf16 %v1088_v57, %v1087_v41  ;;  %v3359_v57 = vld [vmem:[#allocation2 + $0x18] sm:$0xff]  }
 0x15d   : > { %v3908_v32 = vpop.f32.mrf.mxu0  ;;  %v1464_v26 = vpop.f32.mrf.mxu1 }
 0x15e   : > { %2892 = vst [vmem:[#allocation2 + $0x60] sm:$0xff] %v2804_v22  }
 0x15f   : > { %v3910_v58 = vpop.f32.mrf.mxu0  ;;  %v3234_v31 = vpop.f32.mrf.mxu1 }
 0x160   : > { %v1498_v48 = vmax.f32 %v3230_v52, %v3234_v31 }
 0x161   : > { %v3912_v60 = vpop.f32.mrf.mxu0  ;;  %v1477_v61 = vpop.f32.mrf.mxu1 }
 0x162   : > { %v1496_v45 = vmax.f32 %v1461_v23, %v1477_v61  ;;  %v1502_v20 = vmax.f32 %v1494_v29, %v1498_v48  ;;  %v3361_v29 = vld [vmem:[#allocation2 + $0x10] sm:$0xff]  }
 0x163   : > { %v3915_v51 = vpop.f32.mrf.mxu0  ;;  %v3354_v63 = vld [vmem:[#allocation2 + $0x68] sm:$0xff]   ;;  %v3235_v43 = vpop.f32.mrf.mxu1 }
 0x164   : > { %v1499_v24 = vmax.f32 %v3231_v25, %v3235_v43  ;;  %3038 = vmatprep.subr.bf16.mxu0 %v3354_v63  ;;  %v1500_v44 = vmax.f32 %v1492_v40, %v1496_v45  ;;  %v1506_v59 = vmax.f32 %v1502_v20, 0.0  ;;  %v3360_v25 = vld [vmem:[#allocation2 + $0x50] sm:$0xff]   ;;  %v3362_v63 = vld [vmem:[#allocation2 + $0x48] sm:$0xff]   ;;  %v1355_v43 = vmax.f32 %v3902_v37, %v3910_v58 }
 0x165   : > { %v3919_v33 = vpop.f32.mrf.mxu0  ;;  %v3356_v53 = vld [vmem:[#allocation2 + $0x60] sm:$0xff]   ;;  %v1480_v38 = vpop.f32.mrf.mxu1  ;;  %3039 = vmatpush3.bf16.msra.mxu0 %v3355_v19  ;;  %v1353_v20 = vmax.f32 %v3904_v47, %v3912_v60 }
 0x166   : > { %v1503_v34 = vmax.f32 %v1495_v49, %v1499_v24  ;;  %v1497_v28 = vmax.f32 %v1464_v26, %v1480_v38  ;;  %3040 = vmatprep.subr.bf16.mxu0 %v3356_v53  ;;  %v1504_v54 = vmax.f32 %v1500_v44, 0.0  ;;  %v1356_v24 = vmax.f32 %v3906_v27, %v3915_v51  ;;  %v3363_v44 = vld [vmem:[#allocation2 + $0x8] sm:$0xff]  }
 0x167   : > { %v3212_v42 = vpop.f32.mrf.mxu0  ;;  %v3922_v46 = vpop.f32.mrf.mxu1  ;;  %v1354_v37 = vmax.f32 %v3908_v32, %v3919_v33 }
 0x168   : > { %v1507_v35 = vmax.f32 %v1503_v34, 0.0  ;;  %v1501_v18 = vmax.f32 %v1493_v39, %v1497_v28  ;;  %v3364_v28 = vld [vmem:[#allocation2 + $0x40] sm:$0xff]  }
 0x169   : > { %v1322_v50 = vpop.f32.mrf.mxu0  ;;  %v3924_v52 = vpop.f32.mrf.mxu1  ;;  %3041 = vmatpush3.bf16.msra.mxu0 %v3357_v21 }
 0x16a   : > { %v2839_v41 = vpack.c.bf16 %v1507_v35, %v1506_v59  ;;  %v1505_v56 = vmax.f32 %v1501_v18, 0.0  ;;  %3042 = vmatprep.subr.bf16.mxu0 %v3358_v62  ;;  %v3365_v18 = vld [vmem:[#allocation2] sm:$0xff]  }
 0x16b   : > { %v3213_v36 = vpop.f32.mrf.mxu0  ;;  %v3926_v55 = vpop.f32.mrf.mxu1  ;;  %v3376_v62 = vld [vmem:[%s3882_s28] ss:$16 sps:$4 sm:$0x1f]  }
 0x16c   : > { %2899 = vst [vmem:[#allocation2 + $0x98] sm:$0xff] %v2839_v41   ;;  %v2834_v23 = vpack.c.bf16 %v1505_v56, %v1504_v54 }
 0x16d   : > { %v1325_v22 = vpop.f32.mrf.mxu0  ;;  %v3928_v26 = vpop.f32.mrf.mxu1  ;;  %3043 = vmatpush3.bf16.msra.mxu0 %v3359_v57 }
 0x16e   : > { %2898 = vst [vmem:[#allocation2 + $0x90] sm:$0xff] %v2834_v23   ;;  %3044 = vmatprep.subr.bf16.mxu0 %v3360_v25 }
 0x16f   : > { %v3216_v31 = vpop.f32.mrf.mxu0  ;;  %v3262_v61 = vpop.f32.mrf.mxu1 }
 0x170   : > { %v1359_v48 = vmax.f32 %v3212_v42, %v3216_v31 }
 0x171   : > { %v1338_v45 = vpop.f32.mrf.mxu0  ;;  %v1723_v40 = vpop.f32.mrf.mxu1  ;;  %3045 = vmatpush3.bf16.msra.mxu0 %v3361_v29 }
 0x172   : > { %v1357_v19 = vmax.f32 %v1322_v50, %v1338_v45  ;;  %3046 = vmatprep.subr.bf16.mxu0 %v3362_v63  ;;  %v1363_v53 = vmax.f32 %v1355_v43, %v1359_v48  ;;  %v1772_v63 = vmax.f32 %v3922_v46, %v3262_v61 }
 0x173   : > { %v3217_v49 = vpop.f32.mrf.mxu0  ;;  %v3263_v39 = vpop.f32.mrf.mxu1 }
 0x174   : > { %v1360_v38 = vmax.f32 %v3213_v36, %v3217_v49  ;;  %v1361_v58 = vmax.f32 %v1353_v20, %v1357_v19  ;;  %v1367_v47 = vmax.f32 %v1363_v53, 0.0  ;;  %v1770_v20 = vmax.f32 %v3924_v52, %v1723_v40 }
 0x175   : > { %v1341_v34 = vpop.f32.mrf.mxu0  ;;  %v1726_v59 = vpop.f32.mrf.mxu1  ;;  %3047 = vmatpush3.bf16.msra.mxu0 %v3363_v44 }
 0x176   : > { %v1364_v42 = vmax.f32 %v1356_v24, %v1360_v38  ;;  %v1358_v21 = vmax.f32 %v1325_v22, %v1341_v34  ;;  %3048 = vmatprep.subr.bf16.mxu0 %v3364_v28  ;;  %v1365_v54 = vmax.f32 %v1361_v58, 0.0  ;;  %v1773_v24 = vmax.f32 %v3926_v55, %v3263_v39 }
 0x177   : > { %v3938_v35 = vpop.f32.mrf.mxu0  ;;  %v3266_v51 = vpop.f32.mrf.mxu1  ;;  %v1771_v28 = vmax.f32 %v3928_v26, %v1726_v59 }
 0x178   : > { %v1368_v27 = vmax.f32 %v1364_v42, 0.0  ;;  %v1362_v60 = vmax.f32 %v1354_v37, %v1358_v21 }
 0x179   : > { %v3940_v50 = vpop.f32.mrf.mxu0  ;;  %v1739_v32 = vpop.f32.mrf.mxu1  ;;  %3049 = vmatpush3.bf16.msra.mxu0 %v3365_v18 }
 0x17a   : > { %v2829_v41 = vpack.c.bf16 %v1368_v27, %v1367_v47  ;;  %v1366_v56 = vmax.f32 %v1362_v60, 0.0 }
 0x17b   : > { %v3241_v33 = vpop.f32.mrf.mxu0  ;;  %v3267_v57 = vpop.f32.mrf.mxu1 }
 0x17c   : > { %2897 = vst [vmem:[#allocation2 + $0x88] sm:$0xff] %v2829_v41   ;;  %v2824_v36 = vpack.c.bf16 %v1366_v56, %v1365_v54  ;;  %2371 = vmatmul.mubr.bf16.vlgmr.msra.gmra.mxu0 %v3376_v62 }
 0x17d   : > { %v3943_v23 = vpop.f32.mrf.mxu0  ;;  %v1742_v22 = vpop.f32.mrf.mxu1 }
 0x17e   : > { %2896 = vst [vmem:[#allocation2 + $0x80] sm:$0xff] %v2824_v36  }
 0x17f   : > { %v3244_v25 = vpop.f32.mrf.mxu0  ;;  %v3270_v31 = vpop.f32.mrf.mxu1 }
 0x180   : > { %v1776_v48 = vmax.f32 %v3266_v51, %v3270_v31  ;;  %v1633_v36 = vmax.f32 %v3938_v35, %v3244_v25 }
 0x181   : > { %v1584_v29 = vpop.f32.mrf.mxu0  ;;  %v1755_v45 = vpop.f32.mrf.mxu1 }
 0x182   : > { %v1774_v43 = vmax.f32 %v1739_v32, %v1755_v45  ;;  %v1780_v53 = vmax.f32 %v1772_v63, %v1776_v48  ;;  %v1631_v48 = vmax.f32 %v3940_v50, %v1584_v29 }
 0x183   : > { %v3245_v19 = vpop.f32.mrf.mxu0  ;;  %v3271_v49 = vpop.f32.mrf.mxu1 }
 0x184   : > { %v1777_v38 = vmax.f32 %v3267_v57, %v3271_v49  ;;  %v1778_v37 = vmax.f32 %v1770_v20, %v1774_v43  ;;  %v1784_v46 = vmax.f32 %v1780_v53, 0.0  ;;  %v1634_v45 = vmax.f32 %v3241_v33, %v3245_v19 }
 0x185   : > { %v1587_v44 = vpop.f32.mrf.mxu0  ;;  %v1758_v34 = vpop.f32.mrf.mxu1 }
 0x186   : > { %v1781_v58 = vmax.f32 %v1773_v24, %v1777_v38  ;;  %v1775_v42 = vmax.f32 %v1742_v22, %v1758_v34  ;;  %v1782_v52 = vmax.f32 %v1778_v37, 0.0  ;;  %v1632_v53 = vmax.f32 %v3943_v23, %v1587_v44 }
 0x187   : > { %v3248_v21 = vpop.f32.mrf.mxu0  ;;  %v3949_v47 = vpop.f32.mrf.mxu1 }
 0x188   : > { %v1785_v61 = vmax.f32 %v1781_v58, 0.0  ;;  %v1779_v27 = vmax.f32 %v1771_v28, %v1775_v42 }
 0x189   : > { %v1600_v60 = vpop.f32.mrf.mxu0  ;;  %v3951_v51 = vpop.f32.mrf.mxu1 }
 0x18a   : > { %v2859_v55 = vpack.c.bf16 %v1785_v61, %v1784_v46  ;;  %v1783_v40 = vmax.f32 %v1779_v27, 0.0 }
 0x18b   : > { %v3249_v39 = vpop.f32.mrf.mxu0  ;;  %v3953_v18 = vpop.f32.mrf.mxu1 }
 0x18c   : > { %2903 = vst [vmem:[#allocation2 + $0xb8] sm:$0xff] %v2859_v55   ;;  %v2854_v26 = vpack.c.bf16 %v1783_v40, %v1782_v52 }
 0x18d   : > { %v1603_v59 = vpop.f32.mrf.mxu0  ;;  %v3955_v62 = vpop.f32.mrf.mxu1 }
 0x18e   : > { %2902 = vst [vmem:[#allocation2 + $0xb0] sm:$0xff] %v2854_v26  }
 0x18f   : > { %v3252_v54 = vpop.f32.mrf.mxu0  ;;  %v3298_v56 = vpop.f32.mrf.mxu1 }
 0x190   : > { %v1637_v41 = vmax.f32 %v3248_v21, %v3252_v54  ;;  %v2050_v54 = vmax.f32 %v3949_v47, %v3298_v56 }
 0x191   : > { %v1616_v32 = vpop.f32.mrf.mxu0  ;;  %v2001_v22 = vpop.f32.mrf.mxu1 }
 0x192   : > { %v1635_v57 = vmax.f32 %v1600_v60, %v1616_v32  ;;  %v1641_v63 = vmax.f32 %v1633_v36, %v1637_v41 }
 0x193   : > { %v3253_v31 = vpop.f32.mrf.mxu0  ;;  %v3299_v49 = vpop.f32.mrf.mxu1  ;;  %v3366_v20 = vld [vmem:[#allocation2 + $0xb8] sm:$0xff]  }
 0x194   : > { %v1638_v43 = vmax.f32 %v3249_v39, %v3253_v31  ;;  %v1639_v38 = vmax.f32 %v1631_v48, %v1635_v57  ;;  %2380 = vmatpush1.bf16.msra.mxu1 %v3366_v20  ;;  %v1645_v35 = vmax.f32 %v1641_v63, 0.0  ;;  %v2048_v31 = vmax.f32 %v3951_v51, %v2001_v22 }
 0x195   : > { %v1619_v24 = vpop.f32.mrf.mxu0  ;;  %v2004_v37 = vpop.f32.mrf.mxu1  ;;  %2381 = vmatprep.subr.bf16.mxu1 %v3409_v30  ;;  %v3367_v29 = vld [vmem:[#allocation2 + $0xb0] sm:$0xff]   ;;  %v2051_v48 = vmax.f32 %v3953_v18, %v3299_v49 }
 0x196   : > { %v1642_v34 = vmax.f32 %v1634_v45, %v1638_v43  ;;  %v1636_v28 = vmax.f32 %v1603_v59, %v1619_v24  ;;  %v1643_v42 = vmax.f32 %v1639_v38, 0.0  ;;  %v2049_v24 = vmax.f32 %v3955_v62, %v2004_v37 }
 0x197   : > { %v3960_v58 = vpop.f32.mrf.mxu0  ;;  %v3302_v33 = vpop.f32.mrf.mxu1 }
 0x198   : > { %v1646_v25 = vmax.f32 %v1642_v34, 0.0  ;;  %v1640_v50 = vmax.f32 %v1632_v53, %v1636_v28  ;;  %2382 = vmatpush1.bf16.msra.mxu1 %v3367_v29 }
 0x199   : > { %v3963_v19 = vpop.f32.mrf.mxu0  ;;  %v2017_v23 = vpop.f32.mrf.mxu1  ;;  %2383 = vmatprep.subr.bf16.mxu1 %v3409_v30 }
 0x19a   : > { %v2849_v21 = vpack.c.bf16 %v1646_v25, %v1645_v35  ;;  %v1644_v46 = vmax.f32 %v1640_v50, 0.0 }
 0x19b   : > { %v3965_v44 = vpop.f32.mrf.mxu0  ;;  %v3303_v27 = vpop.f32.mrf.mxu1 }
 0x19c   : > { %2901 = vst [vmem:[#allocation2 + $0xa8] sm:$0xff] %v2849_v21   ;;  %v2844_v61 = vpack.c.bf16 %v1644_v46, %v1643_v42  ;;  %v3371_v42 = vld [vmem:[#allocation2 + $0x90] sm:$0xff]  }
 0x19d   : > { %v3968_v60 = vpop.f32.mrf.mxu0  ;;  %v2020_v52 = vpop.f32.mrf.mxu1 }
 0x19e   : > { %2900 = vst [vmem:[#allocation2 + $0xa0] sm:$0xff] %v2844_v61  }
 0x19f   : > { %v3280_v55 = vpop.f32.mrf.mxu0  ;;  %v3306_v40 = vpop.f32.mrf.mxu1 }
 0x1a0   : > { %v2054_v39 = vmax.f32 %v3302_v33, %v3306_v40  ;;  %v3370_v33 = vld [vmem:[#allocation2 + $0x98] sm:$0xff]  }
 0x1a1   : > { %v1862_v26 = vpop.f32.mrf.mxu0  ;;  %v2033_v59 = vpop.f32.mrf.mxu1 }
 0x1a2   : > { %v2052_v41 = vmax.f32 %v2017_v23, %v2033_v59  ;;  %v2058_v45 = vmax.f32 %v2050_v54, %v2054_v39  ;;  %v1911_v23 = vmax.f32 %v3960_v58, %v3280_v55  ;;  %v1909_v40 = vmax.f32 %v3963_v19, %v1862_v26  ;;  %v3373_v58 = vld [vmem:[#allocation2 + $0x80] sm:$0xff]  }
 0x1a3   : > { %v3281_v32 = vpop.f32.mrf.mxu0  ;;  %v3368_v36 = vld [vmem:[#allocation2 + $0xa8] sm:$0xff]   ;;  %v3307_v57 = vpop.f32.mrf.mxu1 }
 0x1a4   : > { %v2055_v63 = vmax.f32 %v3303_v27, %v3307_v57  ;;  %2384 = vmatpush1.bf16.msra.mxu1 %v3368_v36  ;;  %v2056_v53 = vmax.f32 %v2048_v31, %v2052_v41  ;;  %v2062_v28 = vmax.f32 %v2058_v45, 0.0  ;;  %v1912_v39 = vmax.f32 %v3965_v44, %v3281_v32 }
 0x1a5   : > { %v1865_v43 = vpop.f32.mrf.mxu0  ;;  %v2036_v20 = vpop.f32.mrf.mxu1  ;;  %2385 = vmatprep.subr.bf16.mxu1 %v3409_v30  ;;  %v3369_v34 = vld [vmem:[#allocation2 + $0xa0] sm:$0xff]  }
 0x1a6   : > { %v2059_v38 = vmax.f32 %v2051_v48, %v2055_v63  ;;  %v2053_v47 = vmax.f32 %v2020_v52, %v2036_v20  ;;  %v2060_v18 = vmax.f32 %v2056_v53, 0.0  ;;  %v3372_v52 = vld [vmem:[#allocation2 + $0x88] sm:$0xff]   ;;  %v1910_v36 = vmax.f32 %v3968_v60, %v1865_v43 }
 0x1a7   : > { %v3284_v56 = vpop.f32.mrf.mxu0  ;;  %v3381_v53 = vld [vmem:[%s3882_s28 + $0x8] ss:$16 sps:$4 sm:$0x1f]  }
 0x1a8   : > { %v2063_v35 = vmax.f32 %v2059_v38, 0.0  ;;  %v2057_v25 = vmax.f32 %v2049_v24, %v2053_v47  ;;  %2386 = vmatpush1.bf16.msra.mxu1 %v3369_v34 }
 0x1a9   : > { %v1878_v51 = vpop.f32.mrf.mxu0  ;;  %2387 = vmatprep.subr.bf16.mxu1 %v3409_v30 }
 0x1aa   : > { %v2879_v22 = vpack.c.bf16 %v2063_v35, %v2062_v28  ;;  %v2061_v49 = vmax.f32 %v2057_v25, 0.0 }
 0x1ab   : > { %v3285_v50 = vpop.f32.mrf.mxu0 }
 0x1ac   : > { %2907 = vst [vmem:[#allocation2 + $0xd8] sm:$0xff] %v2879_v22   ;;  %v2874_v29 = vpack.c.bf16 %v2061_v49, %v2060_v18  ;;  %2388 = vmatpush1.bf16.msra.mxu1 %v3370_v33 }
 0x1ad   : > { %v1881_v62 = vpop.f32.mrf.mxu0  ;;  %2389 = vmatprep.subr.bf16.mxu1 %v3409_v30 }
 0x1ae   : > { %2906 = vst [vmem:[#allocation2 + $0xd0] sm:$0xff] %v2874_v29   ;;  %v2422_v29 = vld [vmem:[%s4012_s3] sm:$0xff] (%p36_p0) }
 0x1af   : > { %v3288_v37 = vpop.f32.mrf.mxu0 }
 0x1b0   : > { %v1915_v21 = vmax.f32 %v3284_v56, %v3288_v37  ;;  %2390 = vmatpush1.bf16.msra.mxu1 %v3371_v42 }
 0x1b1   : > { %v1894_v46 = vpop.f32.mrf.mxu0  ;;  %2391 = vmatprep.subr.bf16.mxu1 %v3409_v30 }
 0x1b2   : > { %v1913_v61 = vmax.f32 %v1878_v51, %v1894_v46  ;;  %v1919_v59 = vmax.f32 %v1911_v23, %v1915_v21 }
 0x1b3   : > { %v3289_v27 = vpop.f32.mrf.mxu0  ;;  %v3374_v26 = vld [vmem:[#allocation2 + $0xd8] sm:$0xff]  }
 0x1b4   : > { %v1916_v54 = vmax.f32 %v3285_v50, %v3289_v27  ;;  %2392 = vmatpush1.bf16.msra.mxu1 %v3372_v52  ;;  %v1917_v57 = vmax.f32 %v1909_v40, %v1913_v61  ;;  %v1923_v55 = vmax.f32 %v1919_v59, 0.0 }
 0x1b5   : > { %v1897_v41 = vpop.f32.mrf.mxu0  ;;  %2393 = vmatprep.subr.bf16.mxu1 %v3409_v30  ;;  %v3375_v60 = vld [vmem:[#allocation2 + $0xd0] sm:$0xff]  }
 0x1b6   : > { %v1920_v31 = vmax.f32 %v1912_v39, %v1916_v54  ;;  %v1914_v48 = vmax.f32 %v1881_v62, %v1897_v41  ;;  %v1921_v20 = vmax.f32 %v1917_v57, 0.0  ;;  %v2423_v62 = vld [vmem:[%s4012_s3 + $0x8] sm:$0x3] (%p36_p0) }
 0x1b8   : > { %v1924_v45 = vmax.f32 %v1920_v31, 0.0  ;;  %v1918_v63 = vmax.f32 %v1910_v36, %v1914_v48  ;;  %2394 = vmatpush1.bf16.msra.mxu1 %v3373_v58 }
 0x1b9   : > { %2403 = vmatprep.subr.bf16.mxu1 %v3409_v30 }
 0x1ba   : > { %v2869_v19 = vpack.c.bf16 %v1924_v45, %v1923_v55  ;;  %v1922_v44 = vmax.f32 %v1918_v63, 0.0 }
 0x1bc   : > { %2905 = vst [vmem:[#allocation2 + $0xc8] sm:$0xff] %v2869_v19   ;;  %v2864_v32 = vpack.c.bf16 %v1922_v44, %v1921_v20  ;;  %2404 = vmatpush2.bf16.msra.mxu1 %v3374_v26 }
 0x1bd   : > { %2405 = vmatprep.subr.bf16.mxu1 %v3409_v30 }
 0x1be   : > { %2904 = vst [vmem:[#allocation2 + $0xc0] sm:$0xff] %v2864_v32  }
 0x1c0   : > { %2406 = vmatpush2.bf16.msra.mxu1 %v3375_v60 }
 0x1c1   : > { %2407 = vmatprep.subr.bf16.mxu1 %v3409_v30 }
 0x1c3   : > { %v3379_v43 = vld [vmem:[#allocation2 + $0xc8] sm:$0xff]  }
 0x1c4   : > { %2408 = vmatpush2.bf16.msra.mxu1 %v3379_v43 }
 0x1c5   : > { %2409 = vmatprep.subr.bf16.mxu1 %v3409_v30  ;;  %v3380_v24 = vld [vmem:[#allocation2 + $0xc0] sm:$0xff]  }
 0x1c8   : > { %2410 = vmatpush2.bf16.msra.mxu1 %v3380_v24 }
 0x1cb   : > { %2412 = vmatmul.mubr.bf16.vlgmr.msra.gmra.mxu1 %v3381_v53 }
 0x23c   : > { %v3050_v38 = vpop.f32.mrf.mxu0 }
 0x23e   : > { %v3051_v47 = vpop.f32.mrf.mxu0 }
 0x23f   : > { %v3052_v34 = vadd.f32 %v3051_v47, %v3050_v38 }
 0x240   : > { %v3053_v56 = vpop.f32.mrf.mxu0 }
 0x242   : > { %v3054_v28 = vpop.f32.mrf.mxu0 }
 0x243   : > { %v3055_v18 = vadd.f32 %v3054_v28, %v3053_v56 }
 0x28b   : > { %v2413_v35 = vpop.f32.mrf.mxu1 }
 0x28c   : > { %v2414_v25 = vadd.f32 %v3052_v34, %v2413_v35 }
 0x28d   : > { %v2415_v51 = vpop.f32.mrf.mxu1 }
 0x28e   : > { %v2420_v22 = vadd.f32 %v3403_v17, %v2414_v25  }
 0x28f   : > { %v2416_v49 = vpop.f32.mrf.mxu1 }
 0x290   : > { %v2417_v50 = vadd.f32 %v3055_v18, %v2416_v49  ;;  %v4015_v17 = vmov %v2420_v22  ;;  %38 = sbr.rel (!%p36_p0) target bundleno = 7 (0x7), region = 45 }
 0x291   : > { %v2418_v33 = vpop.f32.mrf.mxu1  ;;  %v3410_v17 = vmov (%p36_p0), 0  }
 0x292   : > { %v2421_v30 = vadd.f32 %v3399_v16, %v2417_v50   ;;  %3384 = vset.pattern.permute.xlu0 (%p36_p0), %v3410_v17 }
 0x293   :  { %2426 = vperm.xlu0 (%p36_p0), %3384, %v2422_v29  }
 0x294   : > { %v4014_v16 = vmov %v2421_v30 }
 0x297   :  { %2431 = vperm.xlu0 %3384, %v2423_v62  }
 0x30e   :  { %v2427_v37 = vpop.permute.xlu0 %2426 }
 0x30f   :  { %v2434_v42 = vadd.f32 %v2427_v37, %v2420_v22 }
 0x311   :  { %2436 = vst [vmem:[%s4013_s4] sm:$0xff] %v2434_v42 }
 0x312   :  { %v2432_v21 = vpop.permute.xlu0 %2431 }
 0x313   :  { %v2435_v46 = vadd.f32 %v2432_v21, %v2421_v30 }
 0x315   :  { %2437 = vst [vmem:[%s4013_s4 + $0x8] sm:$0x3] %v2435_v46 }

</bundles_post_ra>
